<compile_context>
chip_gen: v6e
topology: v6e:2x2x1
jax: 0.10.0
libtpu: 0.0.40
codegen_flags: <defaults>
</compile_context>

<pallas_src>
import functools
import math

import jax
import jax.numpy as jnp
from jax import lax
from jax.experimental import pallas as pl
from jax.experimental.pallas import tpu as pltpu

# ---------------- config (small synthetic stand-in for bert-base) ----------------
VOCAB = 100
VOCAB_PAD = 128      # pad vocab table to a lane-dense 128 rows for the one-hot MXU gather
MAX_POS = 16
HIDDEN = 32          # stand-in for 768
N_HEADS = 4
HEAD_DIM = HIDDEN // N_HEADS
N_LAYERS = 2         # stand-in for 12
INTERMEDIATE = 64    # 4 * HIDDEN
NUM_CLASSES = 35
OUT_PAD = 128        # lane-dense classifier width; sliced to NUM_CLASSES outside the kernel
LN_EPS = 1e-12
SEQ = 8
BATCH = 4

DOT_DTYPE = jnp.bfloat16   # MXU input dtype for weight matmuls (f32 accumulation)


# ---------------- in-kernel helpers (pure jnp on values, f32 math) ----------------
def _layernorm(x, g, b):
    mu = jnp.mean(x, axis=-1, keepdims=True)
    var = jnp.mean((x - mu) ** 2, axis=-1, keepdims=True)
    return (x - mu) * lax.rsqrt(var + LN_EPS) * g + b


def _gelu(x):
    # TODO(synk): HF BERT default 'gelu' is the exact erf form; tanh approximation used here.
    c = math.sqrt(2.0 / math.pi)
    return 0.5 * x * (1.0 + jnp.tanh(c * (x + 0.044715 * x * x * x)))


# ---------------- the single fused kernel (whole forward, per batch tile) ----------------
def _fused_bert_kernel(ids_ref,                       # (M, 1) int32, M = B_TILE*S
                       mask_ref,                      # (M, M) f32 additive block-diag mask
                       word_ref,                      # (VOCAB_PAD, H) f32
                       pos_ref,                       # (M, H) f32 (position emb tiled B_TILE x)
                       typ_ref,                       # (1, H) f32
                       embg_ref, embb_ref,            # (1, H)
                       wqkv_ref, bqkv_ref,            # (L, H, 3H) bf16, (L, 1, 3H) f32
                       wo_ref, bo_ref,                # (L, H, H) bf16, (L, 1, H) f32
                       ln1g_ref, ln1b_ref,            # (L, 1, H)
                       wi_ref, bi_ref,                # (L, H, I) bf16, (L, 1, I) f32
                       wo2_ref, bo2_ref,              # (L, I, H) bf16, (L, 1, H) f32
                       ln2g_ref, ln2b_ref,            # (L, 1, H)
                       mlpw_ref, mlpb_ref,            # (H, OUT_PAD) bf16, (1, OUT_PAD) f32
                       out_ref,                       # (1, B_TILE, OUT_PAD)
                       *, seq, b_tile):
    m = b_tile * seq

    # --- embeddings: one-hot(ids) @ word_table -> single MXU gather (no serial loop) ---
    ids = ids_ref[...]                                                  # (M, 1) int32
    iota = lax.broadcasted_iota(jnp.int32, (m, VOCAB_PAD), 1)
    onehot = jnp.where(ids == iota, 1.0, 0.0).astype(jnp.float32)       # (M, VOCAB_PAD)
    we = jnp.dot(onehot, word_ref[...], preferred_element_type=jnp.float32)  # (M, H)

    x = we + pos_ref[...] + typ_ref[...]            # word + position + token_type(0)
    h = _layernorm(x, embg_ref[...], embb_ref[...])

    neg = mask_ref[...]                              # block-diagonal additive mask
    scale = 1.0 / math.sqrt(HEAD_DIM)

    for l in range(N_LAYERS):
        # --- multi-head self-attention: fused QKV projection, fused output projection ---
        qkv = jnp.dot(h.astype(DOT_DTYPE), wqkv_ref[l],
                      preferred_element_type=jnp.float32) + bqkv_ref[l]      # (M, 3H)
        ctx = []
        for hd in range(N_HEADS):
            o = hd * HEAD_DIM
            qh = qkv[:, o:o + HEAD_DIM]
            kh = qkv[:, HIDDEN + o:HIDDEN + o + HEAD_DIM]
            vh = qkv[:, 2 * HIDDEN + o:2 * HIDDEN + o + HEAD_DIM]
            s = lax.dot_general(qh, kh, (((1,), (1,)), ((), ())),
                                preferred_element_type=jnp.float32) * scale
            s = s + neg                                                     # keep per-sequence
            s = s - jnp.max(s, axis=-1, keepdims=True)
            p = jnp.exp(s)
            p = p * pl.reciprocal(jnp.sum(p, axis=-1, keepdims=True), approx=True)
            ctx.append(jnp.dot(p, vh, preferred_element_type=jnp.float32))  # (M, dh)
        ctx = jnp.concatenate(ctx, axis=-1)                                 # (M, H)
        attn = jnp.dot(ctx.astype(DOT_DTYPE), wo_ref[l],
                       preferred_element_type=jnp.float32) + bo_ref[l]
        h = _layernorm(attn + h, ln1g_ref[l], ln1b_ref[l])

        # --- feed-forward ---
        inter = _gelu(jnp.dot(h.astype(DOT_DTYPE), wi_ref[l],
                              preferred_element_type=jnp.float32) + bi_ref[l])
        ffn = jnp.dot(inter.astype(DOT_DTYPE), wo2_ref[l],
                      preferred_element_type=jnp.float32) + bo2_ref[l]
        h = _layernorm(ffn + h, ln2g_ref[l], ln2b_ref[l])

    # --- torch.max(x, dim=1)[0] per sequence -> MLP -> sigmoid, lane-dense store ---
    pooled = jnp.concatenate(
        [jnp.max(h[bb * seq:(bb + 1) * seq, :], axis=0, keepdims=True)
         for bb in range(b_tile)], axis=0)                                   # (B_TILE, H)
    logits = jnp.dot(pooled.astype(DOT_DTYPE), mlpw_ref[...],
                     preferred_element_type=jnp.float32) + mlpb_ref[...]
    out_ref[0] = jax.nn.sigmoid(logits)


# ---------------- weight packing (plain JAX glue, done once per call) ----------------
def _pack_inputs(params, seq, b_tile):
    word = jnp.zeros((VOCAB_PAD, HIDDEN), jnp.float32).at[:VOCAB].set(params["word_emb"])
    pos = jnp.tile(params["pos_emb"][:seq], (b_tile, 1))              # (M, H)
    typ = params["type_emb"][0:1]                                     # (1, H): token_type == 0

    layers = params["layers"]
    wqkv = jnp.stack([jnp.concatenate([l["wq"], l["wk"], l["wv"]], axis=1)
                      for l in layers], 0).astype(DOT_DTYPE)          # (L, H, 3H)
    bqkv = jnp.stack([jnp.concatenate([l["bq"], l["bk"], l["bv"]], axis=1)
                      for l in layers], 0)                            # (L, 1, 3H) f32
    wo = jnp.stack([l["wo"] for l in layers], 0).astype(DOT_DTYPE)    # (L, H, H)
    bo = jnp.stack([l["bo"] for l in layers], 0)
    ln1g = jnp.stack([l["ln1_g"] for l in layers], 0)
    ln1b = jnp.stack([l["ln1_b"] for l in layers], 0)
    wi = jnp.stack([l["wi"] for l in layers], 0).astype(DOT_DTYPE)    # (L, H, I)
    bi = jnp.stack([l["bi_"] for l in layers], 0)
    wo2 = jnp.stack([l["wo2"] for l in layers], 0).astype(DOT_DTYPE)  # (L, I, H)
    bo2 = jnp.stack([l["bo2"] for l in layers], 0)
    ln2g = jnp.stack([l["ln2_g"] for l in layers], 0)
    ln2b = jnp.stack([l["ln2_b"] for l in layers], 0)

    # lane-dense padded classifier (extra lanes sliced off outside the kernel)
    mlpw = jnp.zeros((HIDDEN, OUT_PAD), jnp.float32).at[:, :NUM_CLASSES].set(
        params["mlp_w"]).astype(DOT_DTYPE)
    mlpb = jnp.zeros((1, OUT_PAD), jnp.float32).at[:, :NUM_CLASSES].set(params["mlp_b"])

    return [word, pos, typ, params["emb_ln_g"], params["emb_ln_b"],
            wqkv, bqkv, wo, bo, ln1g, ln1b, wi, bi, wo2, bo2, ln2g, ln2b, mlpw, mlpb]


# ---------------- forward (matches MyBert.forward semantics, eval mode) ----------------
def my_bert_forward(params, token_ids, b_tile=None):
    bsz, seq = token_ids.shape
    assert seq <= MAX_POS
    token_ids = token_ids.astype(jnp.int32)                 # x = x.long()

    if b_tile is None:
        # Fatten M per grid step, but keep >= 2 grid steps so v7x's 2 TensorCores share work.
        b_tile = bsz // 2 if (bsz % 2 == 0 and bsz >= 4) else 1
    assert bsz % b_tile == 0
    n_tiles = bsz // b_tile
    m = b_tile * seq

    inputs = _pack_inputs(params, seq, b_tile)
    ids_col = token_ids.reshape(bsz * seq, 1)               # (B*S, 1) int32, lane-1 column

    # additive block-diagonal mask: sequences stacked along M must not attend across each other
    seq_ids = jnp.arange(m, dtype=jnp.int32) // seq
    attn_mask = jnp.where(seq_ids[:, None] == seq_ids[None, :], 0.0, -1e30).astype(jnp.float32)

    def const_spec(a):
        nd = a.ndim
        return pl.BlockSpec(a.shape, lambda t, _nd=nd: (0,) * _nd)   # VMEM-resident constant

    grid_spec = pltpu.PrefetchScalarGridSpec(
        num_scalar_prefetch=0,
        grid=(n_tiles,),
        in_specs=[pl.BlockSpec((m, 1), lambda t: (t, 0)),            # token ids per tile
                  const_spec(attn_mask)] + [const_spec(a) for a in inputs],
        out_specs=pl.BlockSpec((1, b_tile, OUT_PAD), lambda t: (t, 0, 0)),
    )

    out = pl.pallas_call(
        functools.partial(_fused_bert_kernel, seq=seq, b_tile=b_tile),
        grid_spec=grid_spec,
        out_shape=jax.ShapeDtypeStruct((n_tiles, b_tile, OUT_PAD), jnp.float32),
        compiler_params=pltpu.CompilerParams(dimension_semantics=("parallel",)),
    )(ids_col, attn_mask, *inputs)

    # F.dropout(x, alpha, training=self.training) -> identity in eval mode.
    # TODO(synk): training-mode dropout (p=0.5) with PRNG not implemented; eval identity used.
    return out.reshape(bsz, OUT_PAD)[:, :NUM_CLASSES]


# ---------------- deterministic parameter init ----------------
def init_params(seed=0):
    keys = iter(jax.random.split(jax.random.PRNGKey(seed), 128))

    def nrm(shape):
        return 0.02 * jax.random.normal(next(keys), shape, dtype=jnp.float32)

    def zeros(shape):
        return jnp.zeros(shape, jnp.float32)

    def ones(shape):
        return jnp.ones(shape, jnp.float32)

    params = {
        "word_emb": nrm((VOCAB, HIDDEN)),
        "pos_emb": nrm((MAX_POS, HIDDEN)),
        "type_emb": nrm((2, HIDDEN)),
        "emb_ln_g": ones((1, HIDDEN)),
        "emb_ln_b": zeros((1, HIDDEN)),
        "mlp_w": nrm((HIDDEN, NUM_CLASSES)),
        "mlp_b": zeros((1, NUM_CLASSES)),
        "layers": [],
    }
    for _ in range(N_LAYERS):
        params["layers"].append({
            "wq": nrm((HIDDEN, HIDDEN)), "bq": zeros((1, HIDDEN)),
            "wk": nrm((HIDDEN, HIDDEN)), "bk": zeros((1, HIDDEN)),
            "wv": nrm((HIDDEN, HIDDEN)), "bv": zeros((1, HIDDEN)),
            "wo": nrm((HIDDEN, HIDDEN)), "bo": zeros((1, HIDDEN)),
            "ln1_g": ones((1, HIDDEN)), "ln1_b": zeros((1, HIDDEN)),
            "wi": nrm((HIDDEN, INTERMEDIATE)), "bi_": zeros((1, INTERMEDIATE)),
            "wo2": nrm((INTERMEDIATE, HIDDEN)), "bo2": zeros((1, HIDDEN)),
            "ln2_g": ones((1, HIDDEN)), "ln2_b": zeros((1, HIDDEN)),
        })
    return params


if __name__ == "__main__":
    params = init_params(0)
    key = jax.random.PRNGKey(0)
    token_ids = jax.random.randint(key, (BATCH, SEQ), 0, VOCAB, dtype=jnp.int32)

    out = jax.jit(my_bert_forward)(params, token_ids)
    out = jax.block_until_ready(out)

    assert out.shape == (BATCH, NUM_CLASSES)
    assert bool(jnp.all((out >= 0.0) & (out <= 1.0)))
    assert bool(jnp.all(jnp.isfinite(out)))
    print("KERNEL_OK")
</pallas_src>

<mosaic_0001>
module attributes {stable_mosaic.version = 11 : i64} {
  func.func @_fused_bert_kernel(%arg0: i32, %arg1: memref<16x1xi32, #tpu.memory_space<vmem>>, %arg2: memref<16x16xf32, #tpu.memory_space<vmem>>, %arg3: memref<128x32xf32, #tpu.memory_space<vmem>>, %arg4: memref<16x32xf32, #tpu.memory_space<vmem>>, %arg5: memref<1x32xf32, #tpu.memory_space<vmem>>, %arg6: memref<1x32xf32, #tpu.memory_space<vmem>>, %arg7: memref<1x32xf32, #tpu.memory_space<vmem>>, %arg8: memref<2x32x96xbf16, #tpu.memory_space<vmem>>, %arg9: memref<2x1x96xf32, #tpu.memory_space<vmem>>, %arg10: memref<2x32x32xbf16, #tpu.memory_space<vmem>>, %arg11: memref<2x1x32xf32, #tpu.memory_space<vmem>>, %arg12: memref<2x1x32xf32, #tpu.memory_space<vmem>>, %arg13: memref<2x1x32xf32, #tpu.memory_space<vmem>>, %arg14: memref<2x32x64xbf16, #tpu.memory_space<vmem>>, %arg15: memref<2x1x64xf32, #tpu.memory_space<vmem>>, %arg16: memref<2x64x32xbf16, #tpu.memory_space<vmem>>, %arg17: memref<2x1x32xf32, #tpu.memory_space<vmem>>, %arg18: memref<2x1x32xf32, #tpu.memory_space<vmem>>, %arg19: memref<2x1x32xf32, #tpu.memory_space<vmem>>, %arg20: memref<32x128xbf16, #tpu.memory_space<vmem>>, %arg21: memref<1x128xf32, #tpu.memory_space<vmem>>, %arg22: memref<1x2x128xf32, #tpu.memory_space<vmem>>) attributes {dimension_semantics = [#tpu.dimension_semantics<parallel>], iteration_bounds = array<i64: 2>, scalar_prefetch = 0 : i64, scratch_operands = 0 : i64, tpu.core_type = #tpu.core_type<tc>, window_params = [{transform_indices = @transform_0, window_bounds = array<i64: 16, 1>}, {pipeline_mode = #tpu.pipeline_mode<synchronous>, transform_indices = @transform_1, window_bounds = array<i64: 16, 16>}, {pipeline_mode = #tpu.pipeline_mode<synchronous>, transform_indices = @transform_2, window_bounds = array<i64: 128, 32>}, {pipeline_mode = #tpu.pipeline_mode<synchronous>, transform_indices = @transform_3, window_bounds = array<i64: 16, 32>}, {pipeline_mode = #tpu.pipeline_mode<synchronous>, transform_indices = @transform_4, window_bounds = array<i64: 1, 32>}, {pipeline_mode = #tpu.pipeline_mode<synchronous>, transform_indices = @transform_5, window_bounds = array<i64: 1, 32>}, {pipeline_mode = #tpu.pipeline_mode<synchronous>, transform_indices = @transform_6, window_bounds = array<i64: 1, 32>}, {pipeline_mode = #tpu.pipeline_mode<synchronous>, transform_indices = @transform_7, window_bounds = array<i64: 2, 32, 96>}, {pipeline_mode = #tpu.pipeline_mode<synchronous>, transform_indices = @transform_8, window_bounds = array<i64: 2, 1, 96>}, {pipeline_mode = #tpu.pipeline_mode<synchronous>, transform_indices = @transform_9, window_bounds = array<i64: 2, 32, 32>}, {pipeline_mode = #tpu.pipeline_mode<synchronous>, transform_indices = @transform_10, window_bounds = array<i64: 2, 1, 32>}, {pipeline_mode = #tpu.pipeline_mode<synchronous>, transform_indices = @transform_11, window_bounds = array<i64: 2, 1, 32>}, {pipeline_mode = #tpu.pipeline_mode<synchronous>, transform_indices = @transform_12, window_bounds = array<i64: 2, 1, 32>}, {pipeline_mode = #tpu.pipeline_mode<synchronous>, transform_indices = @transform_13, window_bounds = array<i64: 2, 32, 64>}, {pipeline_mode = #tpu.pipeline_mode<synchronous>, transform_indices = @transform_14, window_bounds = array<i64: 2, 1, 64>}, {pipeline_mode = #tpu.pipeline_mode<synchronous>, transform_indices = @transform_15, window_bounds = array<i64: 2, 64, 32>}, {pipeline_mode = #tpu.pipeline_mode<synchronous>, transform_indices = @transform_16, window_bounds = array<i64: 2, 1, 32>}, {pipeline_mode = #tpu.pipeline_mode<synchronous>, transform_indices = @transform_17, window_bounds = array<i64: 2, 1, 32>}, {pipeline_mode = #tpu.pipeline_mode<synchronous>, transform_indices = @transform_18, window_bounds = array<i64: 2, 1, 32>}, {pipeline_mode = #tpu.pipeline_mode<synchronous>, transform_indices = @transform_19, window_bounds = array<i64: 32, 128>}, {pipeline_mode = #tpu.pipeline_mode<synchronous>, transform_indices = @transform_20, window_bounds = array<i64: 1, 128>}, {transform_indices = @transform_21, window_bounds = array<i64: 1, 2, 128>}]} {
    %c0 = arith.constant 0 : index
    %c0_0 = arith.constant 0 : index
    %0 = vector.load %arg1[%c0, %c0_0] : memref<16x1xi32, #tpu.memory_space<vmem>>, vector<16x1xi32>
    %1 = tpu.iota {dimensions = array<i32: 1>} : vector<16x128xi32>
    %2 = vector.broadcast %0 : vector<16x1xi32> to vector<16x128xi32>
    %3 = arith.cmpi eq, %2, %1 : vector<16x128xi32>
    %cst = arith.constant 1.000000e+00 : f32
    %cst_1 = arith.constant 0.000000e+00 : f32
    %4 = vector.broadcast %cst : f32 to vector<16x128xf32>
    %5 = vector.broadcast %cst_1 : f32 to vector<16x128xf32>
    %6 = arith.select %3, %4, %5 : vector<16x128xi1>, vector<16x128xf32>
    %c0_2 = arith.constant 0 : index
    %c0_3 = arith.constant 0 : index
    %7 = vector.load %arg3[%c0_2, %c0_3] : memref<128x32xf32, #tpu.memory_space<vmem>>, vector<128x32xf32>
    %cst_4 = arith.constant dense<0.000000e+00> : vector<16x32xf32>
    %8 = tpu.matmul %6, %7, %cst_4 {dimension_numbers = #tpu.dot_dimension_numbers<[1], [0], [0], [1], [0, 0, 1, 1], [], []>} : vector<16x128xf32>, vector<128x32xf32>, vector<16x32xf32> -> vector<16x32xf32>
    %c0_5 = arith.constant 0 : index
    %c0_6 = arith.constant 0 : index
    %9 = vector.load %arg4[%c0_5, %c0_6] : memref<16x32xf32, #tpu.memory_space<vmem>>, vector<16x32xf32>
    %10 = arith.addf %8, %9 : vector<16x32xf32>
    %c0_7 = arith.constant 0 : index
    %c0_8 = arith.constant 0 : index
    %11 = vector.load %arg5[%c0_7, %c0_8] : memref<1x32xf32, #tpu.memory_space<vmem>>, vector<1x32xf32>
    %12 = vector.broadcast %11 : vector<1x32xf32> to vector<16x32xf32>
    %13 = arith.addf %10, %12 : vector<16x32xf32>
    %c0_9 = arith.constant 0 : index
    %c0_10 = arith.constant 0 : index
    %14 = vector.load %arg6[%c0_9, %c0_10] : memref<1x32xf32, #tpu.memory_space<vmem>>, vector<1x32xf32>
    %c0_11 = arith.constant 0 : index
    %c0_12 = arith.constant 0 : index
    %15 = vector.load %arg7[%c0_11, %c0_12] : memref<1x32xf32, #tpu.memory_space<vmem>>, vector<1x32xf32>
    %cst_13 = arith.constant dense<0.000000e+00> : vector<16xf32>
    %16 = vector.multi_reduction <add>, %13, %cst_13 [1] : vector<16x32xf32> to vector<16xf32>
    %17 = vector.shape_cast %16 : vector<16xf32> to vector<16x1xf32>
    %cst_14 = arith.constant 3.200000e+01 : f32
    %18 = vector.broadcast %cst_14 : f32 to vector<16x1xf32>
    %19 = arith.divf %17, %18 : vector<16x1xf32>
    %20 = vector.broadcast %19 : vector<16x1xf32> to vector<16x32xf32>
    %21 = arith.subf %13, %20 : vector<16x32xf32>
    %22 = arith.mulf %21, %21 : vector<16x32xf32>
    %cst_15 = arith.constant dense<0.000000e+00> : vector<16xf32>
    %23 = vector.multi_reduction <add>, %22, %cst_15 [1] : vector<16x32xf32> to vector<16xf32>
    %24 = vector.shape_cast %23 : vector<16xf32> to vector<16x1xf32>
    %cst_16 = arith.constant 3.200000e+01 : f32
    %25 = vector.broadcast %cst_16 : f32 to vector<16x1xf32>
    %26 = arith.divf %24, %25 : vector<16x1xf32>
    %27 = vector.broadcast %19 : vector<16x1xf32> to vector<16x32xf32>
    %28 = arith.subf %13, %27 : vector<16x32xf32>
    %cst_17 = arith.constant 9.99999996E-13 : f32
    %29 = vector.broadcast %cst_17 : f32 to vector<16x1xf32>
    %30 = arith.addf %26, %29 : vector<16x1xf32>
    %31 = math.rsqrt %30 : vector<16x1xf32>
    %32 = vector.broadcast %31 : vector<16x1xf32> to vector<16x32xf32>
    %33 = arith.mulf %28, %32 : vector<16x32xf32>
    %34 = vector.broadcast %14 : vector<1x32xf32> to vector<16x32xf32>
    %35 = arith.mulf %33, %34 : vector<16x32xf32>
    %36 = vector.broadcast %15 : vector<1x32xf32> to vector<16x32xf32>
    %37 = arith.addf %35, %36 : vector<16x32xf32>
    %c0_18 = arith.constant 0 : index
    %c0_19 = arith.constant 0 : index
    %38 = vector.load %arg2[%c0_18, %c0_19] : memref<16x16xf32, #tpu.memory_space<vmem>>, vector<16x16xf32>
    %39 = arith.truncf %37 : vector<16x32xf32> to vector<16x32xbf16>
    %c0_20 = arith.constant 0 : index
    %c0_21 = arith.constant 0 : index
    %c0_22 = arith.constant 0 : index
    %40 = vector.load %arg8[%c0_20, %c0_21, %c0_22] : memref<2x32x96xbf16, #tpu.memory_space<vmem>>, vector<1x32x96xbf16>
    %41 = vector.shape_cast %40 : vector<1x32x96xbf16> to vector<32x96xbf16>
    %cst_23 = arith.constant dense<0.000000e+00> : vector<16x96xf32>
    %42 = tpu.matmul %39, %41, %cst_23 {dimension_numbers = #tpu.dot_dimension_numbers<[1], [0], [0], [1], [0, 0, 1, 1], [], []>} : vector<16x32xbf16>, vector<32x96xbf16>, vector<16x96xf32> -> vector<16x96xf32>
    %c0_24 = arith.constant 0 : index
    %c0_25 = arith.constant 0 : index
    %c0_26 = arith.constant 0 : index
    %43 = vector.load %arg9[%c0_24, %c0_25, %c0_26] : memref<2x1x96xf32, #tpu.memory_space<vmem>>, vector<1x1x96xf32>
    %44 = vector.shape_cast %43 : vector<1x1x96xf32> to vector<1x96xf32>
    %45 = vector.broadcast %44 : vector<1x96xf32> to vector<16x96xf32>
    %46 = arith.addf %42, %45 : vector<16x96xf32>
    %47 = vector.extract_strided_slice %46 {offsets = [0, 0], sizes = [16, 8], strides = [1, 1]} : vector<16x96xf32> to vector<16x8xf32>
    %48 = vector.extract_strided_slice %46 {offsets = [0, 32], sizes = [16, 8], strides = [1, 1]} : vector<16x96xf32> to vector<16x8xf32>
    %49 = vector.extract_strided_slice %46 {offsets = [0, 64], sizes = [16, 8], strides = [1, 1]} : vector<16x96xf32> to vector<16x8xf32>
    %cst_27 = arith.constant dense<0.000000e+00> : vector<16x16xf32>
    %50 = tpu.matmul %47, %48, %cst_27 {dimension_numbers = #tpu.dot_dimension_numbers<[1], [1], [0], [0], [0, 0, 1, 0], [], []>} : vector<16x8xf32>, vector<16x8xf32>, vector<16x16xf32> -> vector<16x16xf32>
    %cst_28 = arith.constant 0.353553385 : f32
    %51 = vector.broadcast %cst_28 : f32 to vector<16x16xf32>
    %52 = arith.mulf %50, %51 : vector<16x16xf32>
    %53 = arith.addf %52, %38 : vector<16x16xf32>
    %cst_29 = arith.constant dense<0xFF800000> : vector<16xf32>
    %54 = vector.multi_reduction <maximumf>, %53, %cst_29 [1] : vector<16x16xf32> to vector<16xf32>
    %55 = vector.shape_cast %54 : vector<16xf32> to vector<16x1xf32>
    %56 = vector.broadcast %55 : vector<16x1xf32> to vector<16x16xf32>
    %57 = arith.subf %53, %56 : vector<16x16xf32>
    %58 = math.exp %57 : vector<16x16xf32>
    %cst_30 = arith.constant dense<0.000000e+00> : vector<16xf32>
    %59 = vector.multi_reduction <add>, %58, %cst_30 [1] : vector<16x16xf32> to vector<16xf32>
    %60 = vector.shape_cast %59 : vector<16xf32> to vector<16x1xf32>
    %61 = tpu.reciprocal %60 {approx = true} : vector<16x1xf32> -> vector<16x1xf32>
    %62 = vector.broadcast %61 : vector<16x1xf32> to vector<16x16xf32>
    %63 = arith.mulf %58, %62 : vector<16x16xf32>
    %cst_31 = arith.constant dense<0.000000e+00> : vector<16x8xf32>
    %64 = tpu.matmul %63, %49, %cst_31 {dimension_numbers = #tpu.dot_dimension_numbers<[1], [0], [0], [1], [0, 0, 1, 1], [], []>} : vector<16x16xf32>, vector<16x8xf32>, vector<16x8xf32> -> vector<16x8xf32>
    %65 = vector.extract_strided_slice %46 {offsets = [0, 8], sizes = [16, 8], strides = [1, 1]} : vector<16x96xf32> to vector<16x8xf32>
    %66 = vector.extract_strided_slice %46 {offsets = [0, 40], sizes = [16, 8], strides = [1, 1]} : vector<16x96xf32> to vector<16x8xf32>
    %67 = vector.extract_strided_slice %46 {offsets = [0, 72], sizes = [16, 8], strides = [1, 1]} : vector<16x96xf32> to vector<16x8xf32>
    %cst_32 = arith.constant dense<0.000000e+00> : vector<16x16xf32>
    %68 = tpu.matmul %65, %66, %cst_32 {dimension_numbers = #tpu.dot_dimension_numbers<[1], [1], [0], [0], [0, 0, 1, 0], [], []>} : vector<16x8xf32>, vector<16x8xf32>, vector<16x16xf32> -> vector<16x16xf32>
    %cst_33 = arith.constant 0.353553385 : f32
    %69 = vector.broadcast %cst_33 : f32 to vector<16x16xf32>
    %70 = arith.mulf %68, %69 : vector<16x16xf32>
    %71 = arith.addf %70, %38 : vector<16x16xf32>
    %cst_34 = arith.constant dense<0xFF800000> : vector<16xf32>
    %72 = vector.multi_reduction <maximumf>, %71, %cst_34 [1] : vector<16x16xf32> to vector<16xf32>
    %73 = vector.shape_cast %72 : vector<16xf32> to vector<16x1xf32>
    %74 = vector.broadcast %73 : vector<16x1xf32> to vector<16x16xf32>
    %75 = arith.subf %71, %74 : vector<16x16xf32>
    %76 = math.exp %75 : vector<16x16xf32>
    %cst_35 = arith.constant dense<0.000000e+00> : vector<16xf32>
    %77 = vector.multi_reduction <add>, %76, %cst_35 [1] : vector<16x16xf32> to vector<16xf32>
    %78 = vector.shape_cast %77 : vector<16xf32> to vector<16x1xf32>
    %79 = tpu.reciprocal %78 {approx = true} : vector<16x1xf32> -> vector<16x1xf32>
    %80 = vector.broadcast %79 : vector<16x1xf32> to vector<16x16xf32>
    %81 = arith.mulf %76, %80 : vector<16x16xf32>
    %cst_36 = arith.constant dense<0.000000e+00> : vector<16x8xf32>
    %82 = tpu.matmul %81, %67, %cst_36 {dimension_numbers = #tpu.dot_dimension_numbers<[1], [0], [0], [1], [0, 0, 1, 1], [], []>} : vector<16x16xf32>, vector<16x8xf32>, vector<16x8xf32> -> vector<16x8xf32>
    %83 = vector.extract_strided_slice %46 {offsets = [0, 16], sizes = [16, 8], strides = [1, 1]} : vector<16x96xf32> to vector<16x8xf32>
    %84 = vector.extract_strided_slice %46 {offsets = [0, 48], sizes = [16, 8], strides = [1, 1]} : vector<16x96xf32> to vector<16x8xf32>
    %85 = vector.extract_strided_slice %46 {offsets = [0, 80], sizes = [16, 8], strides = [1, 1]} : vector<16x96xf32> to vector<16x8xf32>
    %cst_37 = arith.constant dense<0.000000e+00> : vector<16x16xf32>
    %86 = tpu.matmul %83, %84, %cst_37 {dimension_numbers = #tpu.dot_dimension_numbers<[1], [1], [0], [0], [0, 0, 1, 0], [], []>} : vector<16x8xf32>, vector<16x8xf32>, vector<16x16xf32> -> vector<16x16xf32>
    %cst_38 = arith.constant 0.353553385 : f32
    %87 = vector.broadcast %cst_38 : f32 to vector<16x16xf32>
    %88 = arith.mulf %86, %87 : vector<16x16xf32>
    %89 = arith.addf %88, %38 : vector<16x16xf32>
    %cst_39 = arith.constant dense<0xFF800000> : vector<16xf32>
    %90 = vector.multi_reduction <maximumf>, %89, %cst_39 [1] : vector<16x16xf32> to vector<16xf32>
    %91 = vector.shape_cast %90 : vector<16xf32> to vector<16x1xf32>
    %92 = vector.broadcast %91 : vector<16x1xf32> to vector<16x16xf32>
    %93 = arith.subf %89, %92 : vector<16x16xf32>
    %94 = math.exp %93 : vector<16x16xf32>
    %cst_40 = arith.constant dense<0.000000e+00> : vector<16xf32>
    %95 = vector.multi_reduction <add>, %94, %cst_40 [1] : vector<16x16xf32> to vector<16xf32>
    %96 = vector.shape_cast %95 : vector<16xf32> to vector<16x1xf32>
    %97 = tpu.reciprocal %96 {approx = true} : vector<16x1xf32> -> vector<16x1xf32>
    %98 = vector.broadcast %97 : vector<16x1xf32> to vector<16x16xf32>
    %99 = arith.mulf %94, %98 : vector<16x16xf32>
    %cst_41 = arith.constant dense<0.000000e+00> : vector<16x8xf32>
    %100 = tpu.matmul %99, %85, %cst_41 {dimension_numbers = #tpu.dot_dimension_numbers<[1], [0], [0], [1], [0, 0, 1, 1], [], []>} : vector<16x16xf32>, vector<16x8xf32>, vector<16x8xf32> -> vector<16x8xf32>
    %101 = vector.extract_strided_slice %46 {offsets = [0, 24], sizes = [16, 8], strides = [1, 1]} : vector<16x96xf32> to vector<16x8xf32>
    %102 = vector.extract_strided_slice %46 {offsets = [0, 56], sizes = [16, 8], strides = [1, 1]} : vector<16x96xf32> to vector<16x8xf32>
    %103 = vector.extract_strided_slice %46 {offsets = [0, 88], sizes = [16, 8], strides = [1, 1]} : vector<16x96xf32> to vector<16x8xf32>
    %cst_42 = arith.constant dense<0.000000e+00> : vector<16x16xf32>
    %104 = tpu.matmul %101, %102, %cst_42 {dimension_numbers = #tpu.dot_dimension_numbers<[1], [1], [0], [0], [0, 0, 1, 0], [], []>} : vector<16x8xf32>, vector<16x8xf32>, vector<16x16xf32> -> vector<16x16xf32>
    %cst_43 = arith.constant 0.353553385 : f32
    %105 = vector.broadcast %cst_43 : f32 to vector<16x16xf32>
    %106 = arith.mulf %104, %105 : vector<16x16xf32>
    %107 = arith.addf %106, %38 : vector<16x16xf32>
    %cst_44 = arith.constant dense<0xFF800000> : vector<16xf32>
    %108 = vector.multi_reduction <maximumf>, %107, %cst_44 [1] : vector<16x16xf32> to vector<16xf32>
    %109 = vector.shape_cast %108 : vector<16xf32> to vector<16x1xf32>
    %110 = vector.broadcast %109 : vector<16x1xf32> to vector<16x16xf32>
    %111 = arith.subf %107, %110 : vector<16x16xf32>
    %112 = math.exp %111 : vector<16x16xf32>
    %cst_45 = arith.constant dense<0.000000e+00> : vector<16xf32>
    %113 = vector.multi_reduction <add>, %112, %cst_45 [1] : vector<16x16xf32> to vector<16xf32>
    %114 = vector.shape_cast %113 : vector<16xf32> to vector<16x1xf32>
    %115 = tpu.reciprocal %114 {approx = true} : vector<16x1xf32> -> vector<16x1xf32>
    %116 = vector.broadcast %115 : vector<16x1xf32> to vector<16x16xf32>
    %117 = arith.mulf %112, %116 : vector<16x16xf32>
    %cst_46 = arith.constant dense<0.000000e+00> : vector<16x8xf32>
    %118 = tpu.matmul %117, %103, %cst_46 {dimension_numbers = #tpu.dot_dimension_numbers<[1], [0], [0], [1], [0, 0, 1, 1], [], []>} : vector<16x16xf32>, vector<16x8xf32>, vector<16x8xf32> -> vector<16x8xf32>
    %119 = tpu.concatenate %64, %82, %100, %118 in 1 : vector<16x8xf32>, vector<16x8xf32>, vector<16x8xf32>, vector<16x8xf32> -> vector<16x32xf32>
    %120 = arith.truncf %119 : vector<16x32xf32> to vector<16x32xbf16>
    %c0_47 = arith.constant 0 : index
    %c0_48 = arith.constant 0 : index
    %c0_49 = arith.constant 0 : index
    %121 = vector.load %arg10[%c0_47, %c0_48, %c0_49] : memref<2x32x32xbf16, #tpu.memory_space<vmem>>, vector<1x32x32xbf16>
    %122 = vector.shape_cast %121 : vector<1x32x32xbf16> to vector<32x32xbf16>
    %cst_50 = arith.constant dense<0.000000e+00> : vector<16x32xf32>
    %123 = tpu.matmul %120, %122, %cst_50 {dimension_numbers = #tpu.dot_dimension_numbers<[1], [0], [0], [1], [0, 0, 1, 1], [], []>} : vector<16x32xbf16>, vector<32x32xbf16>, vector<16x32xf32> -> vector<16x32xf32>
    %c0_51 = arith.constant 0 : index
    %c0_52 = arith.constant 0 : index
    %c0_53 = arith.constant 0 : index
    %124 = vector.load %arg11[%c0_51, %c0_52, %c0_53] : memref<2x1x32xf32, #tpu.memory_space<vmem>>, vector<1x1x32xf32>
    %125 = vector.shape_cast %124 : vector<1x1x32xf32> to vector<1x32xf32>
    %126 = vector.broadcast %125 : vector<1x32xf32> to vector<16x32xf32>
    %127 = arith.addf %123, %126 : vector<16x32xf32>
    %128 = arith.addf %127, %37 : vector<16x32xf32>
    %c0_54 = arith.constant 0 : index
    %c0_55 = arith.constant 0 : index
    %c0_56 = arith.constant 0 : index
    %129 = vector.load %arg12[%c0_54, %c0_55, %c0_56] : memref<2x1x32xf32, #tpu.memory_space<vmem>>, vector<1x1x32xf32>
    %130 = vector.shape_cast %129 : vector<1x1x32xf32> to vector<1x32xf32>
    %c0_57 = arith.constant 0 : index
    %c0_58 = arith.constant 0 : index
    %c0_59 = arith.constant 0 : index
    %131 = vector.load %arg13[%c0_57, %c0_58, %c0_59] : memref<2x1x32xf32, #tpu.memory_space<vmem>>, vector<1x1x32xf32>
    %132 = vector.shape_cast %131 : vector<1x1x32xf32> to vector<1x32xf32>
    %cst_60 = arith.constant dense<0.000000e+00> : vector<16xf32>
    %133 = vector.multi_reduction <add>, %128, %cst_60 [1] : vector<16x32xf32> to vector<16xf32>
    %134 = vector.shape_cast %133 : vector<16xf32> to vector<16x1xf32>
    %cst_61 = arith.constant 3.200000e+01 : f32
    %135 = vector.broadcast %cst_61 : f32 to vector<16x1xf32>
    %136 = arith.divf %134, %135 : vector<16x1xf32>
    %137 = vector.broadcast %136 : vector<16x1xf32> to vector<16x32xf32>
    %138 = arith.subf %128, %137 : vector<16x32xf32>
    %139 = arith.mulf %138, %138 : vector<16x32xf32>
    %cst_62 = arith.constant dense<0.000000e+00> : vector<16xf32>
    %140 = vector.multi_reduction <add>, %139, %cst_62 [1] : vector<16x32xf32> to vector<16xf32>
    %141 = vector.shape_cast %140 : vector<16xf32> to vector<16x1xf32>
    %cst_63 = arith.constant 3.200000e+01 : f32
    %142 = vector.broadcast %cst_63 : f32 to vector<16x1xf32>
    %143 = arith.divf %141, %142 : vector<16x1xf32>
    %144 = vector.broadcast %136 : vector<16x1xf32> to vector<16x32xf32>
    %145 = arith.subf %128, %144 : vector<16x32xf32>
    %cst_64 = arith.constant 9.99999996E-13 : f32
    %146 = vector.broadcast %cst_64 : f32 to vector<16x1xf32>
    %147 = arith.addf %143, %146 : vector<16x1xf32>
    %148 = math.rsqrt %147 : vector<16x1xf32>
    %149 = vector.broadcast %148 : vector<16x1xf32> to vector<16x32xf32>
    %150 = arith.mulf %145, %149 : vector<16x32xf32>
    %151 = vector.broadcast %130 : vector<1x32xf32> to vector<16x32xf32>
    %152 = arith.mulf %150, %151 : vector<16x32xf32>
    %153 = vector.broadcast %132 : vector<1x32xf32> to vector<16x32xf32>
    %154 = arith.addf %152, %153 : vector<16x32xf32>
    %155 = arith.truncf %154 : vector<16x32xf32> to vector<16x32xbf16>
    %c0_65 = arith.constant 0 : index
    %c0_66 = arith.constant 0 : index
    %c0_67 = arith.constant 0 : index
    %156 = vector.load %arg14[%c0_65, %c0_66, %c0_67] : memref<2x32x64xbf16, #tpu.memory_space<vmem>>, vector<1x32x64xbf16>
    %157 = vector.shape_cast %156 : vector<1x32x64xbf16> to vector<32x64xbf16>
    %cst_68 = arith.constant dense<0.000000e+00> : vector<16x64xf32>
    %158 = tpu.matmul %155, %157, %cst_68 {dimension_numbers = #tpu.dot_dimension_numbers<[1], [0], [0], [1], [0, 0, 1, 1], [], []>} : vector<16x32xbf16>, vector<32x64xbf16>, vector<16x64xf32> -> vector<16x64xf32>
    %c0_69 = arith.constant 0 : index
    %c0_70 = arith.constant 0 : index
    %c0_71 = arith.constant 0 : index
    %159 = vector.load %arg15[%c0_69, %c0_70, %c0_71] : memref<2x1x64xf32, #tpu.memory_space<vmem>>, vector<1x1x64xf32>
    %160 = vector.shape_cast %159 : vector<1x1x64xf32> to vector<1x64xf32>
    %161 = vector.broadcast %160 : vector<1x64xf32> to vector<16x64xf32>
    %162 = arith.addf %158, %161 : vector<16x64xf32>
    %cst_72 = arith.constant 5.000000e-01 : f32
    %163 = vector.broadcast %cst_72 : f32 to vector<16x64xf32>
    %164 = arith.mulf %163, %162 : vector<16x64xf32>
    %cst_73 = arith.constant 4.471500e-02 : f32
    %165 = vector.broadcast %cst_73 : f32 to vector<16x64xf32>
    %166 = arith.mulf %165, %162 : vector<16x64xf32>
    %167 = arith.mulf %166, %162 : vector<16x64xf32>
    %168 = arith.mulf %167, %162 : vector<16x64xf32>
    %169 = arith.addf %162, %168 : vector<16x64xf32>
    %cst_74 = arith.constant 0.797884583 : f32
    %170 = vector.broadcast %cst_74 : f32 to vector<16x64xf32>
    %171 = arith.mulf %170, %169 : vector<16x64xf32>
    %172 = math.tanh %171 : vector<16x64xf32>
    %cst_75 = arith.constant 1.000000e+00 : f32
    %173 = vector.broadcast %cst_75 : f32 to vector<16x64xf32>
    %174 = arith.addf %173, %172 : vector<16x64xf32>
    %175 = arith.mulf %164, %174 : vector<16x64xf32>
    %176 = arith.truncf %175 : vector<16x64xf32> to vector<16x64xbf16>
    %c0_76 = arith.constant 0 : index
    %c0_77 = arith.constant 0 : index
    %c0_78 = arith.constant 0 : index
    %177 = vector.load %arg16[%c0_76, %c0_77, %c0_78] : memref<2x64x32xbf16, #tpu.memory_space<vmem>>, vector<1x64x32xbf16>
    %178 = vector.shape_cast %177 : vector<1x64x32xbf16> to vector<64x32xbf16>
    %cst_79 = arith.constant dense<0.000000e+00> : vector<16x32xf32>
    %179 = tpu.matmul %176, %178, %cst_79 {dimension_numbers = #tpu.dot_dimension_numbers<[1], [0], [0], [1], [0, 0, 1, 1], [], []>} : vector<16x64xbf16>, vector<64x32xbf16>, vector<16x32xf32> -> vector<16x32xf32>
    %c0_80 = arith.constant 0 : index
    %c0_81 = arith.constant 0 : index
    %c0_82 = arith.constant 0 : index
    %180 = vector.load %arg17[%c0_80, %c0_81, %c0_82] : memref<2x1x32xf32, #tpu.memory_space<vmem>>, vector<1x1x32xf32>
    %181 = vector.shape_cast %180 : vector<1x1x32xf32> to vector<1x32xf32>
    %182 = vector.broadcast %181 : vector<1x32xf32> to vector<16x32xf32>
    %183 = arith.addf %179, %182 : vector<16x32xf32>
    %184 = arith.addf %183, %154 : vector<16x32xf32>
    %c0_83 = arith.constant 0 : index
    %c0_84 = arith.constant 0 : index
    %c0_85 = arith.constant 0 : index
    %185 = vector.load %arg18[%c0_83, %c0_84, %c0_85] : memref<2x1x32xf32, #tpu.memory_space<vmem>>, vector<1x1x32xf32>
    %186 = vector.shape_cast %185 : vector<1x1x32xf32> to vector<1x32xf32>
    %c0_86 = arith.constant 0 : index
    %c0_87 = arith.constant 0 : index
    %c0_88 = arith.constant 0 : index
    %187 = vector.load %arg19[%c0_86, %c0_87, %c0_88] : memref<2x1x32xf32, #tpu.memory_space<vmem>>, vector<1x1x32xf32>
    %188 = vector.shape_cast %187 : vector<1x1x32xf32> to vector<1x32xf32>
    %cst_89 = arith.constant dense<0.000000e+00> : vector<16xf32>
    %189 = vector.multi_reduction <add>, %184, %cst_89 [1] : vector<16x32xf32> to vector<16xf32>
    %190 = vector.shape_cast %189 : vector<16xf32> to vector<16x1xf32>
    %cst_90 = arith.constant 3.200000e+01 : f32
    %191 = vector.broadcast %cst_90 : f32 to vector<16x1xf32>
    %192 = arith.divf %190, %191 : vector<16x1xf32>
    %193 = vector.broadcast %192 : vector<16x1xf32> to vector<16x32xf32>
    %194 = arith.subf %184, %193 : vector<16x32xf32>
    %195 = arith.mulf %194, %194 : vector<16x32xf32>
    %cst_91 = arith.constant dense<0.000000e+00> : vector<16xf32>
    %196 = vector.multi_reduction <add>, %195, %cst_91 [1] : vector<16x32xf32> to vector<16xf32>
    %197 = vector.shape_cast %196 : vector<16xf32> to vector<16x1xf32>
    %cst_92 = arith.constant 3.200000e+01 : f32
    %198 = vector.broadcast %cst_92 : f32 to vector<16x1xf32>
    %199 = arith.divf %197, %198 : vector<16x1xf32>
    %200 = vector.broadcast %192 : vector<16x1xf32> to vector<16x32xf32>
    %201 = arith.subf %184, %200 : vector<16x32xf32>
    %cst_93 = arith.constant 9.99999996E-13 : f32
    %202 = vector.broadcast %cst_93 : f32 to vector<16x1xf32>
    %203 = arith.addf %199, %202 : vector<16x1xf32>
    %204 = math.rsqrt %203 : vector<16x1xf32>
    %205 = vector.broadcast %204 : vector<16x1xf32> to vector<16x32xf32>
    %206 = arith.mulf %201, %205 : vector<16x32xf32>
    %207 = vector.broadcast %186 : vector<1x32xf32> to vector<16x32xf32>
    %208 = arith.mulf %206, %207 : vector<16x32xf32>
    %209 = vector.broadcast %188 : vector<1x32xf32> to vector<16x32xf32>
    %210 = arith.addf %208, %209 : vector<16x32xf32>
    %211 = arith.truncf %210 : vector<16x32xf32> to vector<16x32xbf16>
    %c1 = arith.constant 1 : index
    %c0_94 = arith.constant 0 : index
    %c0_95 = arith.constant 0 : index
    %212 = vector.load %arg8[%c1, %c0_94, %c0_95] : memref<2x32x96xbf16, #tpu.memory_space<vmem>>, vector<1x32x96xbf16>
    %213 = vector.shape_cast %212 : vector<1x32x96xbf16> to vector<32x96xbf16>
    %cst_96 = arith.constant dense<0.000000e+00> : vector<16x96xf32>
    %214 = tpu.matmul %211, %213, %cst_96 {dimension_numbers = #tpu.dot_dimension_numbers<[1], [0], [0], [1], [0, 0, 1, 1], [], []>} : vector<16x32xbf16>, vector<32x96xbf16>, vector<16x96xf32> -> vector<16x96xf32>
    %c1_97 = arith.constant 1 : index
    %c0_98 = arith.constant 0 : index
    %c0_99 = arith.constant 0 : index
    %215 = vector.load %arg9[%c1_97, %c0_98, %c0_99] : memref<2x1x96xf32, #tpu.memory_space<vmem>>, vector<1x1x96xf32>
    %216 = vector.shape_cast %215 : vector<1x1x96xf32> to vector<1x96xf32>
    %217 = vector.broadcast %216 : vector<1x96xf32> to vector<16x96xf32>
    %218 = arith.addf %214, %217 : vector<16x96xf32>
    %219 = vector.extract_strided_slice %218 {offsets = [0, 0], sizes = [16, 8], strides = [1, 1]} : vector<16x96xf32> to vector<16x8xf32>
    %220 = vector.extract_strided_slice %218 {offsets = [0, 32], sizes = [16, 8], strides = [1, 1]} : vector<16x96xf32> to vector<16x8xf32>
    %221 = vector.extract_strided_slice %218 {offsets = [0, 64], sizes = [16, 8], strides = [1, 1]} : vector<16x96xf32> to vector<16x8xf32>
    %cst_100 = arith.constant dense<0.000000e+00> : vector<16x16xf32>
    %222 = tpu.matmul %219, %220, %cst_100 {dimension_numbers = #tpu.dot_dimension_numbers<[1], [1], [0], [0], [0, 0, 1, 0], [], []>} : vector<16x8xf32>, vector<16x8xf32>, vector<16x16xf32> -> vector<16x16xf32>
    %cst_101 = arith.constant 0.353553385 : f32
    %223 = vector.broadcast %cst_101 : f32 to vector<16x16xf32>
    %224 = arith.mulf %222, %223 : vector<16x16xf32>
    %225 = arith.addf %224, %38 : vector<16x16xf32>
    %cst_102 = arith.constant dense<0xFF800000> : vector<16xf32>
    %226 = vector.multi_reduction <maximumf>, %225, %cst_102 [1] : vector<16x16xf32> to vector<16xf32>
    %227 = vector.shape_cast %226 : vector<16xf32> to vector<16x1xf32>
    %228 = vector.broadcast %227 : vector<16x1xf32> to vector<16x16xf32>
    %229 = arith.subf %225, %228 : vector<16x16xf32>
    %230 = math.exp %229 : vector<16x16xf32>
    %cst_103 = arith.constant dense<0.000000e+00> : vector<16xf32>
    %231 = vector.multi_reduction <add>, %230, %cst_103 [1] : vector<16x16xf32> to vector<16xf32>
    %232 = vector.shape_cast %231 : vector<16xf32> to vector<16x1xf32>
    %233 = tpu.reciprocal %232 {approx = true} : vector<16x1xf32> -> vector<16x1xf32>
    %234 = vector.broadcast %233 : vector<16x1xf32> to vector<16x16xf32>
    %235 = arith.mulf %230, %234 : vector<16x16xf32>
    %cst_104 = arith.constant dense<0.000000e+00> : vector<16x8xf32>
    %236 = tpu.matmul %235, %221, %cst_104 {dimension_numbers = #tpu.dot_dimension_numbers<[1], [0], [0], [1], [0, 0, 1, 1], [], []>} : vector<16x16xf32>, vector<16x8xf32>, vector<16x8xf32> -> vector<16x8xf32>
    %237 = vector.extract_strided_slice %218 {offsets = [0, 8], sizes = [16, 8], strides = [1, 1]} : vector<16x96xf32> to vector<16x8xf32>
    %238 = vector.extract_strided_slice %218 {offsets = [0, 40], sizes = [16, 8], strides = [1, 1]} : vector<16x96xf32> to vector<16x8xf32>
    %239 = vector.extract_strided_slice %218 {offsets = [0, 72], sizes = [16, 8], strides = [1, 1]} : vector<16x96xf32> to vector<16x8xf32>
    %cst_105 = arith.constant dense<0.000000e+00> : vector<16x16xf32>
    %240 = tpu.matmul %237, %238, %cst_105 {dimension_numbers = #tpu.dot_dimension_numbers<[1], [1], [0], [0], [0, 0, 1, 0], [], []>} : vector<16x8xf32>, vector<16x8xf32>, vector<16x16xf32> -> vector<16x16xf32>
    %cst_106 = arith.constant 0.353553385 : f32
    %241 = vector.broadcast %cst_106 : f32 to vector<16x16xf32>
    %242 = arith.mulf %240, %241 : vector<16x16xf32>
    %243 = arith.addf %242, %38 : vector<16x16xf32>
    %cst_107 = arith.constant dense<0xFF800000> : vector<16xf32>
    %244 = vector.multi_reduction <maximumf>, %243, %cst_107 [1] : vector<16x16xf32> to vector<16xf32>
    %245 = vector.shape_cast %244 : vector<16xf32> to vector<16x1xf32>
    %246 = vector.broadcast %245 : vector<16x1xf32> to vector<16x16xf32>
    %247 = arith.subf %243, %246 : vector<16x16xf32>
    %248 = math.exp %247 : vector<16x16xf32>
    %cst_108 = arith.constant dense<0.000000e+00> : vector<16xf32>
    %249 = vector.multi_reduction <add>, %248, %cst_108 [1] : vector<16x16xf32> to vector<16xf32>
    %250 = vector.shape_cast %249 : vector<16xf32> to vector<16x1xf32>
    %251 = tpu.reciprocal %250 {approx = true} : vector<16x1xf32> -> vector<16x1xf32>
    %252 = vector.broadcast %251 : vector<16x1xf32> to vector<16x16xf32>
    %253 = arith.mulf %248, %252 : vector<16x16xf32>
    %cst_109 = arith.constant dense<0.000000e+00> : vector<16x8xf32>
    %254 = tpu.matmul %253, %239, %cst_109 {dimension_numbers = #tpu.dot_dimension_numbers<[1], [0], [0], [1], [0, 0, 1, 1], [], []>} : vector<16x16xf32>, vector<16x8xf32>, vector<16x8xf32> -> vector<16x8xf32>
    %255 = vector.extract_strided_slice %218 {offsets = [0, 16], sizes = [16, 8], strides = [1, 1]} : vector<16x96xf32> to vector<16x8xf32>
    %256 = vector.extract_strided_slice %218 {offsets = [0, 48], sizes = [16, 8], strides = [1, 1]} : vector<16x96xf32> to vector<16x8xf32>
    %257 = vector.extract_strided_slice %218 {offsets = [0, 80], sizes = [16, 8], strides = [1, 1]} : vector<16x96xf32> to vector<16x8xf32>
    %cst_110 = arith.constant dense<0.000000e+00> : vector<16x16xf32>
    %258 = tpu.matmul %255, %256, %cst_110 {dimension_numbers = #tpu.dot_dimension_numbers<[1], [1], [0], [0], [0, 0, 1, 0], [], []>} : vector<16x8xf32>, vector<16x8xf32>, vector<16x16xf32> -> vector<16x16xf32>
    %cst_111 = arith.constant 0.353553385 : f32
    %259 = vector.broadcast %cst_111 : f32 to vector<16x16xf32>
    %260 = arith.mulf %258, %259 : vector<16x16xf32>
    %261 = arith.addf %260, %38 : vector<16x16xf32>
    %cst_112 = arith.constant dense<0xFF800000> : vector<16xf32>
    %262 = vector.multi_reduction <maximumf>, %261, %cst_112 [1] : vector<16x16xf32> to vector<16xf32>
    %263 = vector.shape_cast %262 : vector<16xf32> to vector<16x1xf32>
    %264 = vector.broadcast %263 : vector<16x1xf32> to vector<16x16xf32>
    %265 = arith.subf %261, %264 : vector<16x16xf32>
    %266 = math.exp %265 : vector<16x16xf32>
    %cst_113 = arith.constant dense<0.000000e+00> : vector<16xf32>
    %267 = vector.multi_reduction <add>, %266, %cst_113 [1] : vector<16x16xf32> to vector<16xf32>
    %268 = vector.shape_cast %267 : vector<16xf32> to vector<16x1xf32>
    %269 = tpu.reciprocal %268 {approx = true} : vector<16x1xf32> -> vector<16x1xf32>
    %270 = vector.broadcast %269 : vector<16x1xf32> to vector<16x16xf32>
    %271 = arith.mulf %266, %270 : vector<16x16xf32>
    %cst_114 = arith.constant dense<0.000000e+00> : vector<16x8xf32>
    %272 = tpu.matmul %271, %257, %cst_114 {dimension_numbers = #tpu.dot_dimension_numbers<[1], [0], [0], [1], [0, 0, 1, 1], [], []>} : vector<16x16xf32>, vector<16x8xf32>, vector<16x8xf32> -> vector<16x8xf32>
    %273 = vector.extract_strided_slice %218 {offsets = [0, 24], sizes = [16, 8], strides = [1, 1]} : vector<16x96xf32> to vector<16x8xf32>
    %274 = vector.extract_strided_slice %218 {offsets = [0, 56], sizes = [16, 8], strides = [1, 1]} : vector<16x96xf32> to vector<16x8xf32>
    %275 = vector.extract_strided_slice %218 {offsets = [0, 88], sizes = [16, 8], strides = [1, 1]} : vector<16x96xf32> to vector<16x8xf32>
    %cst_115 = arith.constant dense<0.000000e+00> : vector<16x16xf32>
    %276 = tpu.matmul %273, %274, %cst_115 {dimension_numbers = #tpu.dot_dimension_numbers<[1], [1], [0], [0], [0, 0, 1, 0], [], []>} : vector<16x8xf32>, vector<16x8xf32>, vector<16x16xf32> -> vector<16x16xf32>
    %cst_116 = arith.constant 0.353553385 : f32
    %277 = vector.broadcast %cst_116 : f32 to vector<16x16xf32>
    %278 = arith.mulf %276, %277 : vector<16x16xf32>
    %279 = arith.addf %278, %38 : vector<16x16xf32>
    %cst_117 = arith.constant dense<0xFF800000> : vector<16xf32>
    %280 = vector.multi_reduction <maximumf>, %279, %cst_117 [1] : vector<16x16xf32> to vector<16xf32>
    %281 = vector.shape_cast %280 : vector<16xf32> to vector<16x1xf32>
    %282 = vector.broadcast %281 : vector<16x1xf32> to vector<16x16xf32>
    %283 = arith.subf %279, %282 : vector<16x16xf32>
    %284 = math.exp %283 : vector<16x16xf32>
    %cst_118 = arith.constant dense<0.000000e+00> : vector<16xf32>
    %285 = vector.multi_reduction <add>, %284, %cst_118 [1] : vector<16x16xf32> to vector<16xf32>
    %286 = vector.shape_cast %285 : vector<16xf32> to vector<16x1xf32>
    %287 = tpu.reciprocal %286 {approx = true} : vector<16x1xf32> -> vector<16x1xf32>
    %288 = vector.broadcast %287 : vector<16x1xf32> to vector<16x16xf32>
    %289 = arith.mulf %284, %288 : vector<16x16xf32>
    %cst_119 = arith.constant dense<0.000000e+00> : vector<16x8xf32>
    %290 = tpu.matmul %289, %275, %cst_119 {dimension_numbers = #tpu.dot_dimension_numbers<[1], [0], [0], [1], [0, 0, 1, 1], [], []>} : vector<16x16xf32>, vector<16x8xf32>, vector<16x8xf32> -> vector<16x8xf32>
    %291 = tpu.concatenate %236, %254, %272, %290 in 1 : vector<16x8xf32>, vector<16x8xf32>, vector<16x8xf32>, vector<16x8xf32> -> vector<16x32xf32>
    %292 = arith.truncf %291 : vector<16x32xf32> to vector<16x32xbf16>
    %c1_120 = arith.constant 1 : index
    %c0_121 = arith.constant 0 : index
    %c0_122 = arith.constant 0 : index
    %293 = vector.load %arg10[%c1_120, %c0_121, %c0_122] : memref<2x32x32xbf16, #tpu.memory_space<vmem>>, vector<1x32x32xbf16>
    %294 = vector.shape_cast %293 : vector<1x32x32xbf16> to vector<32x32xbf16>
    %cst_123 = arith.constant dense<0.000000e+00> : vector<16x32xf32>
    %295 = tpu.matmul %292, %294, %cst_123 {dimension_numbers = #tpu.dot_dimension_numbers<[1], [0], [0], [1], [0, 0, 1, 1], [], []>} : vector<16x32xbf16>, vector<32x32xbf16>, vector<16x32xf32> -> vector<16x32xf32>
    %c1_124 = arith.constant 1 : index
    %c0_125 = arith.constant 0 : index
    %c0_126 = arith.constant 0 : index
    %296 = vector.load %arg11[%c1_124, %c0_125, %c0_126] : memref<2x1x32xf32, #tpu.memory_space<vmem>>, vector<1x1x32xf32>
    %297 = vector.shape_cast %296 : vector<1x1x32xf32> to vector<1x32xf32>
    %298 = vector.broadcast %297 : vector<1x32xf32> to vector<16x32xf32>
    %299 = arith.addf %295, %298 : vector<16x32xf32>
    %300 = arith.addf %299, %210 : vector<16x32xf32>
    %c1_127 = arith.constant 1 : index
    %c0_128 = arith.constant 0 : index
    %c0_129 = arith.constant 0 : index
    %301 = vector.load %arg12[%c1_127, %c0_128, %c0_129] : memref<2x1x32xf32, #tpu.memory_space<vmem>>, vector<1x1x32xf32>
    %302 = vector.shape_cast %301 : vector<1x1x32xf32> to vector<1x32xf32>
    %c1_130 = arith.constant 1 : index
    %c0_131 = arith.constant 0 : index
    %c0_132 = arith.constant 0 : index
    %303 = vector.load %arg13[%c1_130, %c0_131, %c0_132] : memref<2x1x32xf32, #tpu.memory_space<vmem>>, vector<1x1x32xf32>
    %304 = vector.shape_cast %303 : vector<1x1x32xf32> to vector<1x32xf32>
    %cst_133 = arith.constant dense<0.000000e+00> : vector<16xf32>
    %305 = vector.multi_reduction <add>, %300, %cst_133 [1] : vector<16x32xf32> to vector<16xf32>
    %306 = vector.shape_cast %305 : vector<16xf32> to vector<16x1xf32>
    %cst_134 = arith.constant 3.200000e+01 : f32
    %307 = vector.broadcast %cst_134 : f32 to vector<16x1xf32>
    %308 = arith.divf %306, %307 : vector<16x1xf32>
    %309 = vector.broadcast %308 : vector<16x1xf32> to vector<16x32xf32>
    %310 = arith.subf %300, %309 : vector<16x32xf32>
    %311 = arith.mulf %310, %310 : vector<16x32xf32>
    %cst_135 = arith.constant dense<0.000000e+00> : vector<16xf32>
    %312 = vector.multi_reduction <add>, %311, %cst_135 [1] : vector<16x32xf32> to vector<16xf32>
    %313 = vector.shape_cast %312 : vector<16xf32> to vector<16x1xf32>
    %cst_136 = arith.constant 3.200000e+01 : f32
    %314 = vector.broadcast %cst_136 : f32 to vector<16x1xf32>
    %315 = arith.divf %313, %314 : vector<16x1xf32>
    %316 = vector.broadcast %308 : vector<16x1xf32> to vector<16x32xf32>
    %317 = arith.subf %300, %316 : vector<16x32xf32>
    %cst_137 = arith.constant 9.99999996E-13 : f32
    %318 = vector.broadcast %cst_137 : f32 to vector<16x1xf32>
    %319 = arith.addf %315, %318 : vector<16x1xf32>
    %320 = math.rsqrt %319 : vector<16x1xf32>
    %321 = vector.broadcast %320 : vector<16x1xf32> to vector<16x32xf32>
    %322 = arith.mulf %317, %321 : vector<16x32xf32>
    %323 = vector.broadcast %302 : vector<1x32xf32> to vector<16x32xf32>
    %324 = arith.mulf %322, %323 : vector<16x32xf32>
    %325 = vector.broadcast %304 : vector<1x32xf32> to vector<16x32xf32>
    %326 = arith.addf %324, %325 : vector<16x32xf32>
    %327 = arith.truncf %326 : vector<16x32xf32> to vector<16x32xbf16>
    %c1_138 = arith.constant 1 : index
    %c0_139 = arith.constant 0 : index
    %c0_140 = arith.constant 0 : index
    %328 = vector.load %arg14[%c1_138, %c0_139, %c0_140] : memref<2x32x64xbf16, #tpu.memory_space<vmem>>, vector<1x32x64xbf16>
    %329 = vector.shape_cast %328 : vector<1x32x64xbf16> to vector<32x64xbf16>
    %cst_141 = arith.constant dense<0.000000e+00> : vector<16x64xf32>
    %330 = tpu.matmul %327, %329, %cst_141 {dimension_numbers = #tpu.dot_dimension_numbers<[1], [0], [0], [1], [0, 0, 1, 1], [], []>} : vector<16x32xbf16>, vector<32x64xbf16>, vector<16x64xf32> -> vector<16x64xf32>
    %c1_142 = arith.constant 1 : index
    %c0_143 = arith.constant 0 : index
    %c0_144 = arith.constant 0 : index
    %331 = vector.load %arg15[%c1_142, %c0_143, %c0_144] : memref<2x1x64xf32, #tpu.memory_space<vmem>>, vector<1x1x64xf32>
    %332 = vector.shape_cast %331 : vector<1x1x64xf32> to vector<1x64xf32>
    %333 = vector.broadcast %332 : vector<1x64xf32> to vector<16x64xf32>
    %334 = arith.addf %330, %333 : vector<16x64xf32>
    %cst_145 = arith.constant 5.000000e-01 : f32
    %335 = vector.broadcast %cst_145 : f32 to vector<16x64xf32>
    %336 = arith.mulf %335, %334 : vector<16x64xf32>
    %cst_146 = arith.constant 4.471500e-02 : f32
    %337 = vector.broadcast %cst_146 : f32 to vector<16x64xf32>
    %338 = arith.mulf %337, %334 : vector<16x64xf32>
    %339 = arith.mulf %338, %334 : vector<16x64xf32>
    %340 = arith.mulf %339, %334 : vector<16x64xf32>
    %341 = arith.addf %334, %340 : vector<16x64xf32>
    %cst_147 = arith.constant 0.797884583 : f32
    %342 = vector.broadcast %cst_147 : f32 to vector<16x64xf32>
    %343 = arith.mulf %342, %341 : vector<16x64xf32>
    %344 = math.tanh %343 : vector<16x64xf32>
    %cst_148 = arith.constant 1.000000e+00 : f32
    %345 = vector.broadcast %cst_148 : f32 to vector<16x64xf32>
    %346 = arith.addf %345, %344 : vector<16x64xf32>
    %347 = arith.mulf %336, %346 : vector<16x64xf32>
    %348 = arith.truncf %347 : vector<16x64xf32> to vector<16x64xbf16>
    %c1_149 = arith.constant 1 : index
    %c0_150 = arith.constant 0 : index
    %c0_151 = arith.constant 0 : index
    %349 = vector.load %arg16[%c1_149, %c0_150, %c0_151] : memref<2x64x32xbf16, #tpu.memory_space<vmem>>, vector<1x64x32xbf16>
    %350 = vector.shape_cast %349 : vector<1x64x32xbf16> to vector<64x32xbf16>
    %cst_152 = arith.constant dense<0.000000e+00> : vector<16x32xf32>
    %351 = tpu.matmul %348, %350, %cst_152 {dimension_numbers = #tpu.dot_dimension_numbers<[1], [0], [0], [1], [0, 0, 1, 1], [], []>} : vector<16x64xbf16>, vector<64x32xbf16>, vector<16x32xf32> -> vector<16x32xf32>
    %c1_153 = arith.constant 1 : index
    %c0_154 = arith.constant 0 : index
    %c0_155 = arith.constant 0 : index
    %352 = vector.load %arg17[%c1_153, %c0_154, %c0_155] : memref<2x1x32xf32, #tpu.memory_space<vmem>>, vector<1x1x32xf32>
    %353 = vector.shape_cast %352 : vector<1x1x32xf32> to vector<1x32xf32>
    %354 = vector.broadcast %353 : vector<1x32xf32> to vector<16x32xf32>
    %355 = arith.addf %351, %354 : vector<16x32xf32>
    %356 = arith.addf %355, %326 : vector<16x32xf32>
    %c1_156 = arith.constant 1 : index
    %c0_157 = arith.constant 0 : index
    %c0_158 = arith.constant 0 : index
    %357 = vector.load %arg18[%c1_156, %c0_157, %c0_158] : memref<2x1x32xf32, #tpu.memory_space<vmem>>, vector<1x1x32xf32>
    %358 = vector.shape_cast %357 : vector<1x1x32xf32> to vector<1x32xf32>
    %c1_159 = arith.constant 1 : index
    %c0_160 = arith.constant 0 : index
    %c0_161 = arith.constant 0 : index
    %359 = vector.load %arg19[%c1_159, %c0_160, %c0_161] : memref<2x1x32xf32, #tpu.memory_space<vmem>>, vector<1x1x32xf32>
    %360 = vector.shape_cast %359 : vector<1x1x32xf32> to vector<1x32xf32>
    %cst_162 = arith.constant dense<0.000000e+00> : vector<16xf32>
    %361 = vector.multi_reduction <add>, %356, %cst_162 [1] : vector<16x32xf32> to vector<16xf32>
    %362 = vector.shape_cast %361 : vector<16xf32> to vector<16x1xf32>
    %cst_163 = arith.constant 3.200000e+01 : f32
    %363 = vector.broadcast %cst_163 : f32 to vector<16x1xf32>
    %364 = arith.divf %362, %363 : vector<16x1xf32>
    %365 = vector.broadcast %364 : vector<16x1xf32> to vector<16x32xf32>
    %366 = arith.subf %356, %365 : vector<16x32xf32>
    %367 = arith.mulf %366, %366 : vector<16x32xf32>
    %cst_164 = arith.constant dense<0.000000e+00> : vector<16xf32>
    %368 = vector.multi_reduction <add>, %367, %cst_164 [1] : vector<16x32xf32> to vector<16xf32>
    %369 = vector.shape_cast %368 : vector<16xf32> to vector<16x1xf32>
    %cst_165 = arith.constant 3.200000e+01 : f32
    %370 = vector.broadcast %cst_165 : f32 to vector<16x1xf32>
    %371 = arith.divf %369, %370 : vector<16x1xf32>
    %372 = vector.broadcast %364 : vector<16x1xf32> to vector<16x32xf32>
    %373 = arith.subf %356, %372 : vector<16x32xf32>
    %cst_166 = arith.constant 9.99999996E-13 : f32
    %374 = vector.broadcast %cst_166 : f32 to vector<16x1xf32>
    %375 = arith.addf %371, %374 : vector<16x1xf32>
    %376 = math.rsqrt %375 : vector<16x1xf32>
    %377 = vector.broadcast %376 : vector<16x1xf32> to vector<16x32xf32>
    %378 = arith.mulf %373, %377 : vector<16x32xf32>
    %379 = vector.broadcast %358 : vector<1x32xf32> to vector<16x32xf32>
    %380 = arith.mulf %378, %379 : vector<16x32xf32>
    %381 = vector.broadcast %360 : vector<1x32xf32> to vector<16x32xf32>
    %382 = arith.addf %380, %381 : vector<16x32xf32>
    %383 = vector.extract_strided_slice %382 {offsets = [0, 0], sizes = [8, 32], strides = [1, 1]} : vector<16x32xf32> to vector<8x32xf32>
    %cst_167 = arith.constant dense<0xFF800000> : vector<32xf32>
    %384 = vector.multi_reduction <maximumf>, %383, %cst_167 [0] : vector<8x32xf32> to vector<32xf32>
    %385 = vector.shape_cast %384 : vector<32xf32> to vector<1x32xf32>
    %386 = vector.extract_strided_slice %382 {offsets = [8, 0], sizes = [8, 32], strides = [1, 1]} : vector<16x32xf32> to vector<8x32xf32>
    %cst_168 = arith.constant dense<0xFF800000> : vector<32xf32>
    %387 = vector.multi_reduction <maximumf>, %386, %cst_168 [0] : vector<8x32xf32> to vector<32xf32>
    %388 = vector.shape_cast %387 : vector<32xf32> to vector<1x32xf32>
    %389 = tpu.concatenate %385, %388 in 0 : vector<1x32xf32>, vector<1x32xf32> -> vector<2x32xf32>
    %390 = arith.truncf %389 : vector<2x32xf32> to vector<2x32xbf16>
    %c0_169 = arith.constant 0 : index
    %c0_170 = arith.constant 0 : index
    %391 = vector.load %arg20[%c0_169, %c0_170] : memref<32x128xbf16, #tpu.memory_space<vmem>>, vector<32x128xbf16>
    %cst_171 = arith.constant dense<0.000000e+00> : vector<2x128xf32>
    %392 = tpu.matmul %390, %391, %cst_171 {dimension_numbers = #tpu.dot_dimension_numbers<[1], [0], [0], [1], [0, 0, 1, 1], [], []>} : vector<2x32xbf16>, vector<32x128xbf16>, vector<2x128xf32> -> vector<2x128xf32>
    %c0_172 = arith.constant 0 : index
    %c0_173 = arith.constant 0 : index
    %393 = vector.load %arg21[%c0_172, %c0_173] : memref<1x128xf32, #tpu.memory_space<vmem>>, vector<1x128xf32>
    %394 = vector.broadcast %393 : vector<1x128xf32> to vector<2x128xf32>
    %395 = arith.addf %392, %394 : vector<2x128xf32>
    %396 = arith.negf %395 : vector<2x128xf32>
    %397 = math.exp %396 : vector<2x128xf32>
    %cst_174 = arith.constant 1.000000e+00 : f32
    %398 = vector.broadcast %cst_174 : f32 to vector<2x128xf32>
    %399 = arith.addf %398, %397 : vector<2x128xf32>
    %400 = arith.divf %398, %399 : vector<2x128xf32>
    %c0_175 = arith.constant 0 : index
    %c0_176 = arith.constant 0 : index
    %c0_177 = arith.constant 0 : index
    %401 = vector.load %arg22[%c0_175, %c0_176, %c0_177] : memref<1x2x128xf32, #tpu.memory_space<vmem>>, vector<1x2x128xf32>
    %402 = vector.shape_cast %401 : vector<1x2x128xf32> to vector<2x128xf32>
    %403 = vector.shape_cast %400 : vector<2x128xf32> to vector<1x2x128xf32>
    tpu.vector_store %arg22[%c0_175, %c0_176, %c0_177], %403 {strides = array<i32>} : memref<1x2x128xf32, #tpu.memory_space<vmem>>, vector<1x2x128xf32>,
    return
  }
  func.func @transform_0(%arg0: i32) -> (i32, i32) {
    %c0_i32 = arith.constant 0 : i32
    %c0_i32_0 = arith.constant 0 : i32
    return %arg0, %c0_i32 : i32, i32
  }
  func.func @transform_1(%arg0: i32) -> (i32, i32) {
    %c0_i32 = arith.constant 0 : i32
    %c0_i32_0 = arith.constant 0 : i32
    %c0_i32_1 = arith.constant 0 : i32
    return %c0_i32, %c0_i32_0 : i32, i32
  }
  func.func @transform_2(%arg0: i32) -> (i32, i32) {
    %c0_i32 = arith.constant 0 : i32
    %c0_i32_0 = arith.constant 0 : i32
    %c0_i32_1 = arith.constant 0 : i32
    return %c0_i32, %c0_i32_0 : i32, i32
  }
  func.func @transform_3(%arg0: i32) -> (i32, i32) {
    %c0_i32 = arith.constant 0 : i32
    %c0_i32_0 = arith.constant 0 : i32
    %c0_i32_1 = arith.constant 0 : i32
    return %c0_i32, %c0_i32_0 : i32, i32
  }
  func.func @transform_4(%arg0: i32) -> (i32, i32) {
    %c0_i32 = arith.constant 0 : i32
    %c0_i32_0 = arith.constant 0 : i32
    %c0_i32_1 = arith.constant 0 : i32
    return %c0_i32, %c0_i32_0 : i32, i32
  }
  func.func @transform_5(%arg0: i32) -> (i32, i32) {
    %c0_i32 = arith.constant 0 : i32
    %c0_i32_0 = arith.constant 0 : i32
    %c0_i32_1 = arith.constant 0 : i32
    return %c0_i32, %c0_i32_0 : i32, i32
  }
  func.func @transform_6(%arg0: i32) -> (i32, i32) {
    %c0_i32 = arith.constant 0 : i32
    %c0_i32_0 = arith.constant 0 : i32
    %c0_i32_1 = arith.constant 0 : i32
    return %c0_i32, %c0_i32_0 : i32, i32
  }
  func.func @transform_7(%arg0: i32) -> (i32, i32, i32) {
    %c0_i32 = arith.constant 0 : i32
    %c0_i32_0 = arith.constant 0 : i32
    %c0_i32_1 = arith.constant 0 : i32
    %c0_i32_2 = arith.constant 0 : i32
    return %c0_i32, %c0_i32_0, %c0_i32_1 : i32, i32, i32
  }
  func.func @transform_8(%arg0: i32) -> (i32, i32, i32) {
    %c0_i32 = arith.constant 0 : i32
    %c0_i32_0 = arith.constant 0 : i32
    %c0_i32_1 = arith.constant 0 : i32
    %c0_i32_2 = arith.constant 0 : i32
    return %c0_i32, %c0_i32_0, %c0_i32_1 : i32, i32, i32
  }
  func.func @transform_9(%arg0: i32) -> (i32, i32, i32) {
    %c0_i32 = arith.constant 0 : i32
    %c0_i32_0 = arith.constant 0 : i32
    %c0_i32_1 = arith.constant 0 : i32
    %c0_i32_2 = arith.constant 0 : i32
    return %c0_i32, %c0_i32_0, %c0_i32_1 : i32, i32, i32
  }
  func.func @transform_10(%arg0: i32) -> (i32, i32, i32) {
    %c0_i32 = arith.constant 0 : i32
    %c0_i32_0 = arith.constant 0 : i32
    %c0_i32_1 = arith.constant 0 : i32
    %c0_i32_2 = arith.constant 0 : i32
    return %c0_i32, %c0_i32_0, %c0_i32_1 : i32, i32, i32
  }
  func.func @transform_11(%arg0: i32) -> (i32, i32, i32) {
    %c0_i32 = arith.constant 0 : i32
    %c0_i32_0 = arith.constant 0 : i32
    %c0_i32_1 = arith.constant 0 : i32
    %c0_i32_2 = arith.constant 0 : i32
    return %c0_i32, %c0_i32_0, %c0_i32_1 : i32, i32, i32
  }
  func.func @transform_12(%arg0: i32) -> (i32, i32, i32) {
    %c0_i32 = arith.constant 0 : i32
    %c0_i32_0 = arith.constant 0 : i32
    %c0_i32_1 = arith.constant 0 : i32
    %c0_i32_2 = arith.constant 0 : i32
    return %c0_i32, %c0_i32_0, %c0_i32_1 : i32, i32, i32
  }
  func.func @transform_13(%arg0: i32) -> (i32, i32, i32) {
    %c0_i32 = arith.constant 0 : i32
    %c0_i32_0 = arith.constant 0 : i32
    %c0_i32_1 = arith.constant 0 : i32
    %c0_i32_2 = arith.constant 0 : i32
    return %c0_i32, %c0_i32_0, %c0_i32_1 : i32, i32, i32
  }
  func.func @transform_14(%arg0: i32) -> (i32, i32, i32) {
    %c0_i32 = arith.constant 0 : i32
    %c0_i32_0 = arith.constant 0 : i32
    %c0_i32_1 = arith.constant 0 : i32
    %c0_i32_2 = arith.constant 0 : i32
    return %c0_i32, %c0_i32_0, %c0_i32_1 : i32, i32, i32
  }
  func.func @transform_15(%arg0: i32) -> (i32, i32, i32) {
    %c0_i32 = arith.constant 0 : i32
    %c0_i32_0 = arith.constant 0 : i32
    %c0_i32_1 = arith.constant 0 : i32
    %c0_i32_2 = arith.constant 0 : i32
    return %c0_i32, %c0_i32_0, %c0_i32_1 : i32, i32, i32
  }
  func.func @transform_16(%arg0: i32) -> (i32, i32, i32) {
    %c0_i32 = arith.constant 0 : i32
    %c0_i32_0 = arith.constant 0 : i32
    %c0_i32_1 = arith.constant 0 : i32
    %c0_i32_2 = arith.constant 0 : i32
    return %c0_i32, %c0_i32_0, %c0_i32_1 : i32, i32, i32
  }
  func.func @transform_17(%arg0: i32) -> (i32, i32, i32) {
    %c0_i32 = arith.constant 0 : i32
    %c0_i32_0 = arith.constant 0 : i32
    %c0_i32_1 = arith.constant 0 : i32
    %c0_i32_2 = arith.constant 0 : i32
    return %c0_i32, %c0_i32_0, %c0_i32_1 : i32, i32, i32
  }
  func.func @transform_18(%arg0: i32) -> (i32, i32, i32) {
    %c0_i32 = arith.constant 0 : i32
    %c0_i32_0 = arith.constant 0 : i32
    %c0_i32_1 = arith.constant 0 : i32
    %c0_i32_2 = arith.constant 0 : i32
    return %c0_i32, %c0_i32_0, %c0_i32_1 : i32, i32, i32
  }
  func.func @transform_19(%arg0: i32) -> (i32, i32) {
    %c0_i32 = arith.constant 0 : i32
    %c0_i32_0 = arith.constant 0 : i32
    %c0_i32_1 = arith.constant 0 : i32
    return %c0_i32, %c0_i32_0 : i32, i32
  }
  func.func @transform_20(%arg0: i32) -> (i32, i32) {
    %c0_i32 = arith.constant 0 : i32
    %c0_i32_0 = arith.constant 0 : i32
    %c0_i32_1 = arith.constant 0 : i32
    return %c0_i32, %c0_i32_0 : i32, i32
  }
  func.func @transform_21(%arg0: i32) -> (i32, i32, i32) {
    %c0_i32 = arith.constant 0 : i32
    %c0_i32_0 = arith.constant 0 : i32
    %c0_i32_1 = arith.constant 0 : i32
    return %arg0, %c0_i32, %c0_i32_0 : i32, i32, i32
  }
}

</mosaic_0001>

<bundles_post_ra>
// kernel: my_bert_forward.1
= control target key start
LH: loop header
LB: loop body
LE: loop exit
PB: predicated region body
PF: predicated region fallthrough
CT: control target
= control target key end

     0   :  { %s4980_s0 = inlined_call_operand.vmem [shape: s32[32,1], index: 0, kind: input, shape index: {}]   ;;  %s4981_s1 = inlined_call_operand.vmem [shape: f32[16,16], index: 1, kind: input, shape index: {}]   ;;  %s4982_s2 = inlined_call_operand.vmem [shape: f32[128,32], index: 2, kind: input, shape index: {}]   ;;  %s4983_s3 = inlined_call_operand.vmem [shape: f32[16,32], index: 3, kind: input, shape index: {}]   ;;  %s4984_s4 = inlined_call_operand.vmem [shape: f32[1,32], index: 4, kind: input, shape index: {}]   ;;  %s4985_s5 = inlined_call_operand.vmem [shape: f32[1,32], index: 5, kind: input, shape index: {}]   ;;  %s4986_s6 = inlined_call_operand.vmem [shape: f32[1,32], index: 6, kind: input, shape index: {}]   ;;  %s4987_s7 = inlined_call_operand.vmem [shape: bf16[2,32,96], index: 7, kind: input, shape index: {}]   ;;  %s4988_s8 = inlined_call_operand.vmem [shape: f32[2,1,96], index: 8, kind: input, shape index: {}]   ;;  %s4989_s9 = inlined_call_operand.vmem [shape: bf16[2,32,32], index: 9, kind: input, shape index: {}]   ;;  %s4990_s10 = inlined_call_operand.vmem [shape: f32[2,1,32], index: 10, kind: input, shape index: {}]   ;;  %s4991_s11 = inlined_call_operand.vmem [shape: f32[2,1,32], index: 11, kind: input, shape index: {}]   ;;  %s4992_s12 = inlined_call_operand.vmem [shape: f32[2,1,32], index: 12, kind: input, shape index: {}]   ;;  %s4993_s13 = inlined_call_operand.vmem [shape: bf16[2,32,64], index: 13, kind: input, shape index: {}]   ;;  %s4994_s14 = inlined_call_operand.vmem [shape: f32[2,1,64], index: 14, kind: input, shape index: {}]   ;;  %s4995_s15 = inlined_call_operand.vmem [shape: bf16[2,64,32], index: 15, kind: input, shape index: {}]   ;;  %s4996_s16 = inlined_call_operand.vmem [shape: f32[2,1,32], index: 16, kind: input, shape index: {}]   ;;  %s4997_s17 = inlined_call_operand.vmem [shape: f32[2,1,32], index: 17, kind: input, shape index: {}]   ;;  %s4998_s18 = inlined_call_operand.vmem [shape: f32[2,1,32], index: 18, kind: input, shape index: {}]   ;;  %s4999_s19 = inlined_call_operand.vmem [shape: bf16[32,128], index: 19, kind: input, shape index: {}]   ;;  %s5000_s20 = inlined_call_operand.vmem [shape: f32[1,128], index: 20, kind: input, shape index: {}]   ;;  %s5001_s21 = inlined_call_operand.hbm [shape: f32[2,2,128], index: 21, kind: output, shape index: {}]  }
   0x1   :  { %5034 = sst [smem:[#allocation11_spill]] %s4980_s0 }
   0x2   :  { %5035 = sst [smem:[#allocation12_spill]] %s4981_s1 }
   0x3   :  { %5036 = sst [smem:[#allocation13_spill]] %s4982_s2 }
   0x4   :  { %5037 = sst [smem:[#allocation14_spill]] %s4983_s3 }
   0x5   :  { %5038 = sst [smem:[#allocation15_spill]] %s4984_s4 }
   0x6   :  { %5039 = sst [smem:[#allocation16_spill]] %s4985_s5 }
   0x7   :  { %5040 = sst [smem:[#allocation17_spill]] %s4986_s6 }
   0x8   :  { %5041 = sst [smem:[#allocation18_spill]] %s4987_s7 }
   0x9   :  { %5042 = sst [smem:[#allocation19_spill]] %s4988_s8 }
   0xa   :  { %5043 = sst [smem:[#allocation20_spill]] %s5001_s21 }
   0xb   :  { %26 = vsyncpa [#allocation3], 0 }
   0xc   :  { %28 = vsyncpa [#allocation3 + $0x1], 0  ;;  %s4365_s2 = smov 0   ;;  %s4367_s25 = smov 0  }
   0xd   :  { %s4369_s26 = smov 0   ;;  %s4371_s27 = smov 0  }
   0xe LB: > { %5044 = sst [smem:[#allocation5_spill]] %s4222_s2  ;;  %s4386_s3 = sadd.s32 4294967295, %s4234_s27   ;;  %s4234_s27 = sphi %s4371_s27, %s5079_s27   ;;  %s4230_s26 = sphi %s4369_s26, %s5081_s26   ;;  %s4226_s25 = sphi %s4367_s25, %s5083_s25   ;;  %s4222_s2 = sphi %s4365_s2, %s5082_s2  }
   0xf   : > { %5045 = sst [smem:[#allocation6_spill]] %s4230_s26  ;;  %s3485_s28 = sadd.s32 4294967294, %s4234_s27  }
  0x10   : > { %5046 = sst [smem:[#allocation7_spill]] %s4234_s27  ;;  %s4390_s29 = sadd.s32 1, %s4234_s27  }
  0x11   : > { %5047 = sst [smem:[#allocation8_spill]] %s4390_s29  ;;  %s487_s0 = sadd.s32 1, %s4230_s26 }
  0x12   : > { %s484_s4 = ssub.s32 %s4234_s27, %s4390_s29  ;;  %p497_p0 = scmp.ne.s32.totalorder %s4230_s26, %s4226_s25 }
  0x13   : > { %p485_p1 = scmp.eq.s32.totalorder %s484_s4, 0  ;;  %p498_p2 = scmp.eq.s32.totalorder %s4386_s3, 1 }
  0x14   : > { %p503_p3 = scmp.ne.s32.totalorder %s4226_s25, %s4222_s2  ;;  %p504_p4 = scmp.eq.s32.totalorder %s3485_s28, 1 }
  0x15   : > { %s4401_s30 = scalar_select %p485_p1, %s4230_s26, %s487_s0  }
  0x16   : > { %p4403_p5 = por %p498_p2, %p497_p0  ;;  %p4407_p6 = por %p504_p4, %p503_p3 }
  0x17   : > { %5048 = sst [smem:[#allocation9_spill]] %s4401_s30  ;;  %p3488_p7 = scmp.ge.s32.totalorder %s4234_s27, 1 }
  0x18   : > { %s5050_s22 = scalar_select %p4407_p6, 1, 0 }
  0x19   : > { %p591_p8 = scmp.lt.s32.totalorder %s4234_s27, 3 }
  0x1a   : > { %5051 = sst [smem:[#allocation10_spill]] %s5050_s22 }
  0x1b   : > { %p592_p9 = pnand %p3488_p7, %p591_p8 }
  0x1c   : > { %s3490_s23 = sshll.u32 (!%p592_p9), %s4386_s3, 1  ;;  %s5052_s4 = sld [smem:[#allocation13_spill]] (!%p592_p9) }
  0x1d   : > { %595 = sbr.rel (%p592_p9) target bundleno = 7425 (0x1d01), region = 104  ;;  %p652_p10 = scmp.lt.s32.totalorder (!%p592_p9), %s3490_s23, 3 }
  0x1e   : > { %s5053_s27 = sld [smem:[#allocation11_spill]] (!%p592_p9)  ;;  %s5031_s22 = smov (!%p592_p9), 120  }
  0x1f   : > { %s5054_s26 = sld [smem:[#allocation14_spill]] (!%p592_p9)  ;;  %s5029_s24 = smov (!%p592_p9), 112  }
  0x20   : > { %s5056_s2 = sld [smem:[#allocation15_spill]] (!%p592_p9)  ;;  %s5016_s28 = smov (!%p592_p9), 48  }
  0x21   : > { %s5057_s7 = sld [smem:[#allocation18_spill]] (!%p592_p9)  ;;  %s5014_s0 = smov (!%p592_p9), 72  }
  0x22   : > { %v687_v0 = vld [vmem:[%s5052_s4 + $0x78] sm:$0xff]  ;;  %v686_v1 = vld [vmem:[%s5052_s4 + $0x70] sm:$0xff]  ;;  %v4236_v2 = vmov 0   ;;  %v685_v3 = vld [vmem:[%s5052_s4 + $0x68] sm:$0xff]  ;;  %s5085_s23 = smov (!%p652_p10, %s3490_s23), 3  ;;  %v660_v19 = vlaneseq  ;;  %v4237_v22 = vmov 1.0  }
  0x23   : > { %4023 = vset.pattern.permute.xlu0 %v4236_v2  ;;  %3739 = vmatprep.subr.mxu0 %v687_v0  ;;  %v684_v4 = vld [vmem:[%s5052_s4 + $0x60] sm:$0xff]  ;;  %s3491_s1 = sshll.u32 %s5085_s23, 3  ;;  %v683_v5 = vld [vmem:[%s5052_s4 + $0x58] sm:$0xff]  ;;  %v682_v7 = vld [vmem:[%s5052_s4 + $0x50] sm:$0xff]  ;;  %vm776_vm2 = vcmask 261120   ;;  %v4238_v46 = vmov 0.0  }
  0x24   : > { %3740 = vmatpush3.msra.mxu0 %v687_v0  ;;  %s655_s21 = scalar_lea.vmem %s5053_s27, %s3491_s1  ;;  %v681_v8 = vld [vmem:[%s5052_s4 + $0x48] sm:$0xff]  ;;  %v680_v10 = vld [vmem:[%s5052_s4 + $0x40] sm:$0xff]  ;;  %v679_v11 = vld [vmem:[%s5052_s4 + $0x38] sm:$0xff]  ;;  %v661_v20 = vand.u32 127, %v660_v19  ;;  %3774 = vmatprep.subr.bf16.mxu1 %v4238_v46  ;;  %vm4239_vm3 = vmmov 0   ;;  %s5058_s29 = sld [smem:[#allocation16_spill]] }
  0x25   : > { %3741 = vmatprep.subr.mxu0 %v686_v1  ;;  %v658_v6 = vld [vmem:[%s655_s21] sm:$0xff]  ;;  %v659_v9 = vld [vmem:[%s655_s21 + $0x8] sm:$0xff]  ;;  %v678_v12 = vld [vmem:[%s5052_s4 + $0x30] sm:$0xff]  ;;  %s5055_s30 = smov %s5054_s26  ;;  %3778 = vmatprep.mubr.msk.bf16.mxu1 %vm4239_vm3, %v4238_v46  ;;  %s5059_s6 = sld [smem:[#allocation17_spill]]  ;;  %vm896_vm4 = vcmask 64512   ;;  %vm984_vm5 = vcmask 130048  }
  0x26   : > { %3742 = vmatpush3.msra.mxu0 %v686_v1  ;;  %663 = vperm.xlu0 %4023, %v658_v6   ;;  %v677_v13 = vld [vmem:[%s5052_s4 + $0x28] sm:$0xff]  ;;  %v676_v14 = vld [vmem:[%s5052_s4 + $0x20] sm:$0xff]  ;;  %v675_v15 = vld [vmem:[%s5052_s4 + $0x18] sm:$0xff]  ;;  %s5060_s8 = sld [smem:[#allocation19_spill]]  ;;  %s4240_s27 = smov 96   ;;  %vm1734_vm6 = vcmask 195584  }
  0x27   : > { %3743 = vmatprep.subr.mxu0 %v685_v3  ;;  %v674_v16 = vld [vmem:[%s5052_s4 + $0x10] sm:$0xff]  ;;  %v673_v17 = vld [vmem:[%s5052_s4 + $0x8] sm:$0xff]  ;;  %v672_v18 = vld [vmem:[%s5052_s4] sm:$0xff]  ;;  %s5061_s21 = sld [smem:[#allocation12_spill]]  ;;  %s4243_s23 = smov 88   ;;  %vm1977_vm7 = vcmask 523264  }
  0x28   : > { %3744 = vmatpush3.msra.mxu0 %v685_v3  ;;  %v689_v24 = vld [vmem:[%s5054_s26 + $0x8] sm:$0xff]  ;;  %v688_v26 = vld [vmem:[%s5055_s30] sm:$0xff]  ;;  %s5022_s1 = smov 56   ;;  %s5012_s26 = smov 104   ;;  %vm3336_vm8 = vcmask 1040384  }
  0x29   : > { %3745 = vmatprep.subr.mxu0 %v684_v4  ;;  %v3494_v30 = vld [vmem:[%s5056_s2] ss:$0 sm:$0xff]  ;;  %v4054_v45 = vld [vmem:[%s5057_s7 + $0x8] sm:$0xff]   ;;  %s5027_s2 = smov 80  }
  0x2a   : > { %3746 = vmatpush3.msra.mxu0 %v684_v4  ;;  %666 = vperm.xlu0 %4023, %v659_v9   ;;  %v4055_v47 = vld [vmem:[%s5057_s7] sm:$0xff]  }
  0x2b   : > { %3747 = vmatprep.subr.mxu0 %v683_v5  ;;  %3775 = vmatpush3.bf16.msra.mxu1 %v4054_v45  ;;  %v3495_v56 = vld [vmem:[%s5058_s29] ss:$0 sm:$0xff]  ;;  %s5024_s29 = smov 64  }
  0x2c   : > { %3748 = vmatpush3.msra.mxu0 %v683_v5  ;;  %3776 = vmatprep.subr.bf16.mxu1 %v4238_v46  ;;  %v3496_v60 = vld [vmem:[%s5059_s6] ss:$0 sm:$0xff] }
  0x2d   : > { %3749 = vmatprep.subr.mxu0 %v682_v7  ;;  %v3497_v1 = vld [vmem:[%s5060_s8] ss:$0 sm:$0xff] }
  0x2e   : > { %3750 = vmatpush3.msra.mxu0 %v682_v7 }
  0x2f   : > { %3751 = vmatprep.subr.mxu0 %v681_v8  ;;  %3777 = vmatpush3.bf16.msra.mxu1 %v4055_v47 }
  0x30   : > { %3752 = vmatpush3.msra.mxu0 %v681_v8 }
  0x31   : > { %3753 = vmatprep.subr.mxu0 %v680_v10 }
  0x32   : > { %3754 = vmatpush3.msra.mxu0 %v680_v10 }
  0x33   : > { %3755 = vmatprep.subr.mxu0 %v679_v11 }
  0x34   : > { %3756 = vmatpush3.msra.mxu0 %v679_v11  ;;  %v4523_v11 = vld [vmem:[%s5061_s21 + $0x8] sm:$0xff] }
  0x35   : > { %3757 = vmatprep.subr.mxu0 %v678_v12 }
  0x36   : > { %3758 = vmatpush3.msra.mxu0 %v678_v12 }
  0x37   : > { %3759 = vmatprep.subr.mxu0 %v677_v13 }
  0x38   : > { %3760 = vmatpush3.msra.mxu0 %v677_v13 }
  0x39   : > { %3761 = vmatprep.subr.mxu0 %v676_v14 }
  0x3a   : > { %3762 = vmatpush3.msra.mxu0 %v676_v14  ;;  %v4528_v14 = vld [vmem:[%s5061_s21] sm:$0xff] }
  0x3b   : > { %3763 = vmatprep.subr.mxu0 %v675_v15 }
  0x3c   : > { %3764 = vmatpush3.msra.mxu0 %v675_v15 }
  0x3d   : > { %3765 = vmatprep.subr.mxu0 %v674_v16 }
  0x3e   : > { %3766 = vmatpush3.msra.mxu0 %v674_v16 }
  0x3f   : > { %3767 = vmatprep.subr.mxu0 %v673_v17 }
  0x40   : > { %3768 = vmatpush3.msra.mxu0 %v673_v17 }
  0x41   : > { %3769 = vmatprep.subr.mxu0 %v672_v18 }
  0x42   : > { %3770 = vmatpush3.msra.mxu0 %v672_v18 }
  0xa1   : > { %v664_v21 = vpop.permute.xlu0 %663 }
  0xa2   : > { %vm668_vm0 = vcmp.eq.s32.totalorder %v664_v21, %v661_v20 }
  0xa3   : > { %3771 = vmatprep.mubr.msk.f32.mxu0 %vm668_vm0, %v4237_v22 }
  0xa5   : > { %v667_v23 = vpop.permute.xlu0 %666 }
  0xa6   : > { %vm669_vm1 = vcmp.eq.s32.totalorder %v667_v23, %v661_v20 }
  0xa7   : > { %3772 = vmatmul.mubr.msk.f32.vlgmr.msra.gmra.mxu0 %vm669_vm1, %v4237_v22 }
 0x167   : > { %v3773_v25 = vpop.f32.mrf.mxu0 }
 0x168   : > { %v762_v28 = vadd.f32 %v3773_v25, %v689_v24 }
 0x169   : > { %v756_v27 = vpop.f32.mrf.mxu0 }
 0x16a   : > { %v757_v29 = vadd.f32 %v756_v27, %v688_v26  ;;  %v773_v33 = vadd.f32 %v3494_v30, %v762_v28 }
 0x16c   : > { %v772_v31 = vadd.f32 %v3494_v30, %v757_v29  ;;  %v780_v34 = vsel %vm776_vm2, %v773_v33, 0.0 }
 0x16e   : > { %v777_v32 = vsel %vm776_vm2, %v772_v31, 0.0 }
 0x16f   : > { %778 = vadd.xlane.f32.xlu1 %v777_v32 }
 0x173   : > { %781 = vadd.xlane.f32.xlu1 %v780_v34 }
 0x1f8   : > { %v779_v35 = vpop.xlane.xlu1 %778 }
 0x1f9   : > { %v784_v36 = vmul.f32 0.03125, %v779_v35 }
 0x1fb   : > { %v786_v37 = vsub.f32 %v772_v31, %v784_v36 }
 0x1fc   : > { %v782_v38 = vpop.xlane.xlu1 %781 }
 0x1fd   : > { %v785_v39 = vmul.f32 0.03125, %v782_v38  ;;  %v788_v40 = vmul.f32 %v786_v37, %v786_v37 }
 0x1ff   : > { %v787_v41 = vsub.f32 %v773_v33, %v785_v39  ;;  %v790_v42 = vsel %vm776_vm2, %v788_v40, 0.0 }
 0x200   : > { %791 = vadd.xlane.f32.xlu0 %v790_v42 }
 0x201   : > { %v789_v43 = vmul.f32 %v787_v41, %v787_v41 }
 0x203   : > { %v793_v44 = vsel %vm776_vm2, %v789_v43, 0.0 }
 0x204   : > { %794 = vadd.xlane.f32.xlu1 %v793_v44 }
 0x289   : > { %v792_v48 = vpop.xlane.xlu0 %791 }
 0x28a   : > { %v796_v49 = vmul.f32 0.03125, %v792_v48 }
 0x28c   : > { %v798_v50 = vadd.f32 1e-12, %v796_v49 }
 0x28d   : > { %v795_v51 = vpop.xlane.xlu1 %794 }
 0x28e   : > { %4076 = vrsqrt.f32 %v798_v50  ;;  %v797_v52 = vmul.f32 0.03125, %v795_v51 }
 0x290   : > { %v799_v53 = vadd.f32 1e-12, %v797_v52 }
 0x292   : > { %4078 = vrsqrt.f32 %v799_v53 }
 0x29b   : > { %v4077_v54 = vpop.eup %4076 }
 0x29c   : > { %v802_v55 = vmul.f32 %v4077_v54, %v786_v37 }
 0x29e   : > { %v810_v59 = vmul.f32 %v3495_v56, %v802_v55 }
 0x29f   : > { %v4079_v57 = vpop.eup %4078 }
 0x2a0   : > { %v803_v58 = vmul.f32 %v4079_v57, %v787_v41  ;;  %v4494_v62 = vadd.f32 %v3496_v60, %v810_v59 }
 0x2a2   : > { %v811_v61 = vmul.f32 %v3495_v56, %v803_v58 }
 0x2a4   : > { %v4496_v63 = vadd.f32 %v3496_v60, %v811_v61 }
 0x2a6   : > { %v822_v0 = vpack.c.bf16 %v4496_v63, %v4494_v62 }
 0x2a8   : > { %3779 = vmatmul.mubr.msk.bf16.vlgmr.msra.gmra.mxu1 %vm776_vm2, %v822_v0 }
 0x368   : > { %v883_v2 = vpop.f32.mrf.mxu1 }
 0x369   : > { %v4504_v3 = vadd.f32 %v3497_v1, %v883_v2 }
 0x36a   : > { %v3780_v4 = vpop.f32.mrf.mxu1 }
 0x36b   : > { %3786 = vmatprep.mubr.msk.f32.mxu1 %vm896_vm4, %v4504_v3 }
 0x36c   : > { %v886_v5 = vpop.f32.mrf.mxu1 }
 0x36d   : > { %v4508_v6 = vadd.f32 %v3497_v1, %v886_v5 }
 0x36e   : > { %v3781_v7 = vpop.f32.mrf.mxu1 }
 0x36f   : > { %894 = vrot.lane.b32.xlu1 %v4508_v6, %s4240_s27 }
 0x373   : > { %892 = vrot.lane.b32.xlu1 %v4504_v3, %s4240_s27 }
 0x3e1   : > { %v895_v8 = vpop.permute.xlu1 %894 }
 0x3e2   : > { %3782 = vmatprep.subr.msk.mxu1 %vm896_vm4, %v895_v8 }
 0x3e3   : > { %3783 = vmatpush3.xpose.msk.msra.mxu1 %vm896_vm4, %v895_v8 }
 0x3e5   : > { %v893_v9 = vpop.permute.xlu1 %892 }
 0x3e6   : > { %3784 = vmatprep.subr.msk.mxu1 %vm896_vm4, %v893_v9 }
 0x3e7   : > { %3785 = vmatpush3.xpose.msk.msra.mxu1 %vm896_vm4, %v893_v9 }
 0x3ea   : > { %3787 = vmatmul.mubr.msk.f32.vlgmr.msra.gmra.mxu1 %vm896_vm4, %v4508_v6 }
 0x4aa   : > { %v3788_v10 = vpop.f32.mrf.mxu1 }
 0x4ab   : > { %v981_v12 = vmul.f32 0.35355338, %v3788_v10 }
 0x4ac   : > { %v971_v13 = vpop.f32.mrf.mxu1 }
 0x4ad   : > { %v980_v15 = vmul.f32 0.35355338, %v971_v13  ;;  %v983_v16 = vadd.f32 %v981_v12, %v4523_v11 }
 0x4af   : > { %v988_v17 = vsel %vm984_vm5, %v983_v16, -inf  ;;  %v982_v18 = vadd.f32 %v980_v15, %v4528_v14 }
 0x4b0   : > { %989 = vmax.xlane.f32.xlu0 %v988_v17 }
 0x4b1   : > { %v985_v19 = vsel %vm984_vm5, %v982_v18, -inf }
 0x4b2   : > { %986 = vmax.xlane.f32.xlu1 %v985_v19 }
 0x4c3   : > { %1007 = vrot.lane.b32.xlu1 %v4504_v3, %s5024_s29 }
 0x4c6   : > { %1009 = vrot.lane.b32.xlu0 %v4508_v6, %s5024_s29  ;;  %s5026_s29 = smov 24  }
 0x4c7   : > { %1096 = vrot.lane.b32.xlu1 %v4508_v6, %s5031_s22 }
 0x4ca   : > { %1100 = vrot.lane.b32.xlu0 %v4508_v6, %s4243_s23 }
 0x4cb   : > { %1298 = vrot.lane.b32.xlu1 %v4504_v3, %s5029_s24 }
 0x4ce   : > { %1098 = vrot.lane.b32.xlu0 %v4504_v3, %s4243_s23 }
 0x539   : > { %v990_v20 = vpop.xlane.xlu0 %989 }
 0x53a   : > { %v992_v21 = vsub.f32 %v983_v16, %v990_v20 }
 0x53b   : > { %v987_v22 = vpop.xlane.xlu1 %986 }
 0x53c   : > { %v995_v23 = vmul.f32 1.442695, %v992_v21  ;;  %v991_v24 = vsub.f32 %v982_v18, %v987_v22 }
 0x53d   : > { %v1010_v25 = vpop.permute.xlu0 %1009 }
 0x53e   : > { %4080 = vpow2.f32 %v995_v23  ;;  %v993_v26 = vmul.f32 1.442695, %v991_v24  ;;  %3789 = vmatprep.subr.mxu1 %v1010_v25 }
 0x53f   : > { %3790 = vmatpush3.msra.mxu1 %v1010_v25  ;;  %v1008_v27 = vpop.permute.xlu1 %1007 }
 0x540   : > { %4082 = vpow2.f32 %v993_v26  ;;  %3791 = vmatprep.subr.mxu1 %v1008_v27 }
 0x541   : > { %v1101_v28 = vpop.permute.xlu0 %1100  ;;  %3792 = vmatpush3.msra.mxu1 %v1008_v27 }
 0x542   : > { %3796 = vmatprep.subr.msk.mxu1 %vm896_vm4, %v1101_v28 }
 0x543   : > { %v1097_v29 = vpop.permute.xlu1 %1096 }
 0x545   : > { %v1099_v35 = vpop.permute.xlu0 %1098 }
 0x547   : > { %v1299_v30 = vpop.permute.xlu1 %1298 }
 0x548   : > { %3814 = vmatprep.mubr.msk.f32.mxu0 %vm896_vm4, %v1299_v30 }
 0x54b   : > { %v4081_v31 = vpop.eup %4080 }
 0x54c   : > { %v1000_v32 = vsel %vm984_vm5, %v4081_v31, 0.0 }
 0x54d   : > { %v4083_v33 = vpop.eup %4082  ;;  %1001 = vadd.xlane.f32.xlu0 %v1000_v32 }
 0x54e   : > { %v997_v34 = vsel %vm984_vm5, %v4083_v33, 0.0 }
 0x551   : > { %998 = vadd.xlane.f32.xlu0 %v997_v34 }
 0x567   : > { %1304 = vrot.lane.b32.xlu0 %v4508_v6, %s5027_s2 }
 0x56b   : > { %1094 = vrot.lane.b32.xlu0 %v4504_v3, %s5031_s22  ;;  %s5068_s22 = smov 72  }
 0x56f   : > { %1302 = vrot.lane.b32.xlu0 %v4504_v3, %s5027_s2  ;;  %s5067_s2 = smov 48  }
 0x573   : > { %1300 = vrot.lane.b32.xlu0 %v4508_v6, %s5029_s24  ;;  %s5069_s24 = smov 104  }
 0x5d6   : > { %v1002_v36 = vpop.xlane.xlu0 %1001 }
 0x5d7   : > { %4084 = vrcp.f32 %v1002_v36 }
 0x5da   : > { %v999_v37 = vpop.xlane.xlu0 %998 }
 0x5db   : > { %4086 = vrcp.f32 %v999_v37 }
 0x5de   : > { %v1305_v38 = vpop.permute.xlu0 %1304 }
 0x5df   : > { %3810 = vmatprep.subr.msk.mxu0 %vm896_vm4, %v1305_v38 }
 0x5e0   : > { %3811 = vmatpush3.xpose.msk.msra.mxu0 %vm896_vm4, %v1305_v38 }
 0x5e2   : > { %v1095_v39 = vpop.permute.xlu0 %1094 }
 0x5e4   : > { %v4085_v41 = vpop.eup %4084 }
 0x5e5   : > { %v1006_v45 = vmul.f32 %v4085_v41, %v4081_v31 }
 0x5e6   : > { %v1303_v40 = vpop.permute.xlu0 %1302 }
 0x5e7   : > { %3812 = vmatprep.subr.msk.mxu0 %vm896_vm4, %v1303_v40 }
 0x5e8   : > { %v4087_v42 = vpop.eup %4086  ;;  %3813 = vmatpush3.xpose.msk.msra.mxu0 %vm896_vm4, %v1303_v40 }
 0x5e9   : > { %v1005_v43 = vmul.f32 %v4087_v42, %v4083_v33  ;;  %3838 = vmatprep.subr.bf16.mxu0 %v4238_v46 }
 0x5ea   : > { %v1301_v44 = vpop.permute.xlu0 %1300 }
 0x5eb   : > { %3793 = vmatprep.mubr.msk.f32.mxu1 %vm984_vm5, %v1005_v43  ;;  %3815 = vmatmul.mubr.msk.f32.vlgmr.msra.gmra.mxu0 %vm896_vm4, %v1301_v44 }
 0x5ec   : > { %3794 = vmatmul.mubr.msk.f32.vlgmr.msra.gmra.mxu1 %vm984_vm5, %v1006_v45  ;;  %3842 = vmatprep.mubr.msk.bf16.mxu0 %vm4239_vm3, %v4238_v46 }
 0x5ed   : > { %3797 = vmatpush3.xpose.msk.msra.mxu1 %vm896_vm4, %v1101_v28  ;;  %3800 = vmatprep.mubr.msk.f32.mxu1 %vm896_vm4, %v1095_v39 }
 0x5ee   : > { %3798 = vmatprep.subr.msk.mxu1 %vm896_vm4, %v1099_v35 }
 0x5f1   : > { %3799 = vmatpush3.xpose.msk.msra.mxu1 %vm896_vm4, %v1099_v35 }
 0x5f4   : > { %3801 = vmatmul.mubr.msk.f32.vlgmr.msra.gmra.mxu1 %vm896_vm4, %v1097_v29 }
 0x6ab   : > { %v3816_v47 = vpop.f32.mrf.mxu0 }
 0x6ac   : > { %v4573_v48 = vpop.f32.mrf.mxu1  ;;  %v1390_v55 = vmul.f32 0.35355338, %v3816_v47 }
 0x6ad   : > { %v1380_v49 = vpop.f32.mrf.mxu0 }
 0x6ae   : > { %v4575_v50 = vpop.f32.mrf.mxu1  ;;  %v1389_v52 = vmul.f32 0.35355338, %v1380_v49  ;;  %v1392_v0 = vadd.f32 %v1390_v55, %v4523_v11 }
 0x6b0   : > { %v1391_v60 = vadd.f32 %v1389_v52, %v4528_v14  ;;  %v1396_v2 = vsel %vm984_vm5, %v1392_v0, -inf }
 0x6b2   : > { %v1393_v1 = vsel %vm984_vm5, %v1391_v60, -inf }
 0x6b4   : > { %v3802_v51 = vpop.f32.mrf.mxu1 }
 0x6b5   : > { %v1186_v53 = vmul.f32 0.35355338, %v3802_v51 }
 0x6b6   : > { %v1176_v54 = vpop.f32.mrf.mxu1 }
 0x6b7   : > { %v1185_v56 = vmul.f32 0.35355338, %v1176_v54  ;;  %v1188_v57 = vadd.f32 %v1186_v53, %v4523_v11 }
 0x6b9   : > { %v1192_v58 = vsel %vm984_vm5, %v1188_v57, -inf  ;;  %v1187_v59 = vadd.f32 %v1185_v56, %v4528_v14 }
 0x6ba   : > { %1193 = vmax.xlane.f32.xlu0 %v1192_v58 }
 0x6bb   : > { %v1189_v61 = vsel %vm984_vm5, %v1187_v59, -inf }
 0x6bc   : > { %1190 = vmax.xlane.f32.xlu1 %v1189_v61 }
 0x6be   : > { %1394 = vmax.xlane.f32.xlu0 %v1393_v1 }
 0x6c0   : > { %1397 = vmax.xlane.f32.xlu1 %v1396_v2 }
 0x743   : > { %v1194_v4 = vpop.xlane.xlu0 %1193 }
 0x744   : > { %v1196_v21 = vsub.f32 %v1188_v57, %v1194_v4 }
 0x745   : > { %v1191_v5 = vpop.xlane.xlu1 %1190 }
 0x746   : > { %v1195_v19 = vsub.f32 %v1187_v59, %v1191_v5  ;;  %v1199_v22 = vmul.f32 1.442695, %v1196_v21 }
 0x747   : > { %v1395_v7 = vpop.xlane.xlu0 %1394 }
 0x748   : > { %v1399_v8 = vsub.f32 %v1391_v60, %v1395_v7  ;;  %v1197_v20 = vmul.f32 1.442695, %v1195_v19 }
 0x749   : > { %v1398_v9 = vpop.xlane.xlu1 %1397 }
 0x74a   : > { %v1401_v10 = vmul.f32 1.442695, %v1399_v8  ;;  %v1400_v12 = vsub.f32 %v1392_v0, %v1398_v9 }
 0x74c   : > { %4088 = vpow2.f32 %v1401_v10  ;;  %v1403_v13 = vmul.f32 1.442695, %v1400_v12 }
 0x74e   : > { %4090 = vpow2.f32 %v1403_v13 }
 0x74f   : > { %4092 = vpow2.f32 %v1197_v20 }
 0x750   : > { %4094 = vpow2.f32 %v1199_v22 }
 0x759   : > { %v4089_v15 = vpop.eup %4088 }
 0x75a   : > { %v1405_v16 = vsel %vm984_vm5, %v4089_v15, 0.0 }
 0x75b   : > { %v4091_v17 = vpop.eup %4090  ;;  %1406 = vadd.xlane.f32.xlu0 %v1405_v16 }
 0x75c   : > { %v1408_v18 = vsel %vm984_vm5, %v4091_v17, 0.0  ;;  %v4093_v23 = vpop.eup %4092 }
 0x75d   : > { %1409 = vadd.xlane.f32.xlu1 %v1408_v18  ;;  %v1201_v24 = vsel %vm984_vm5, %v4093_v23, 0.0  ;;  %v4095_v25 = vpop.eup %4094 }
 0x75e   : > { %v1204_v26 = vsel %vm984_vm5, %v4095_v25, 0.0 }
 0x76e   : > { %1211 = vrot.lane.b32.xlu1 %v4504_v3, %s5022_s1 }
 0x771   : > { %1213 = vrot.lane.b32.xlu0 %v4508_v6, %s5022_s1  ;;  %s5062_s1 = smov 120  }
 0x772   : > { %1417 = vrot.lane.b32.xlu1 %v4508_v6, %s5016_s28 }
 0x790   : > { %1202 = vadd.xlane.f32.xlu0 %v1201_v24 }
 0x796   : > { %1205 = vadd.xlane.f32.xlu1 %v1204_v26 }
 0x7a6   : > { %1415 = vrot.lane.b32.xlu0 %v4504_v3, %s5016_s28  ;;  %s5018_s28 = smov 16  }
 0x7a7   : > { %1508 = vrot.lane.b32.xlu1 %v4508_v6, %s5014_s0 }
 0x7aa   : > { %1506 = vrot.lane.b32.xlu0 %v4504_v3, %s5014_s0  ;;  %s5019_s0 = smov 8  }
 0x7ab   : > { %1502 = vrot.lane.b32.xlu1 %v4504_v3, %s5012_s26 }
 0x7ae   : > { %1504 = vrot.lane.b32.xlu0 %v4508_v6, %s5012_s26  ;;  %s5020_s26 = smov 40  }
 0x7e4   : > { %v1407_v27 = vpop.xlane.xlu0 %1406 }
 0x7e6   : > { %v1410_v28 = vpop.xlane.xlu1 %1409 }
 0x7e8   : > { %v1214_v29 = vpop.permute.xlu0 %1213 }
 0x7e9   : > { %3803 = vmatprep.subr.mxu1 %v1214_v29 }
 0x7ea   : > { %3804 = vmatpush3.msra.mxu1 %v1214_v29  ;;  %v1212_v30 = vpop.permute.xlu1 %1211 }
 0x7eb   : > { %3805 = vmatprep.subr.mxu1 %v1212_v30 }
 0x7ec   : > { %3806 = vmatpush3.msra.mxu1 %v1212_v30 }
 0x7ee   : > { %v1418_v31 = vpop.permute.xlu1 %1417 }
 0x7ef   : > { %3817 = vmatprep.subr.mxu1 %v1418_v31 }
 0x819   : > { %v1203_v32 = vpop.xlane.xlu0 %1202 }
 0x81a   : > { %4096 = vrcp.f32 %v1203_v32 }
 0x81b   : > { %4098 = vrcp.f32 %v1407_v27 }
 0x81d   : > { %v1416_v41 = vpop.permute.xlu0 %1415 }
 0x81f   : > { %v1206_v33 = vpop.xlane.xlu1 %1205 }
 0x820   : > { %4100 = vrcp.f32 %v1206_v33 }
 0x821   : > { %4102 = vrcp.f32 %v1410_v28  ;;  %v1507_v45 = vpop.permute.xlu0 %1506 }
 0x823   : > { %v1509_v38 = vpop.permute.xlu1 %1508 }
 0x825   : > { %v1505_v47 = vpop.permute.xlu0 %1504 }
 0x827   : > { %v4097_v34 = vpop.eup %4096  ;;  %v1503_v44 = vpop.permute.xlu1 %1502 }
 0x828   : > { %v1209_v35 = vmul.f32 %v4097_v34, %v4093_v23  ;;  %v4099_v36 = vpop.eup %4098  ;;  %v4057_v23 = vld [vmem:[%s4989_s9] sm:$0xff]  }
 0x829   : > { %v1413_v42 = vmul.f32 %v4099_v36, %v4089_v15 }
 0x82a   : > { %3807 = vmatprep.mubr.msk.f32.mxu1 %vm984_vm5, %v1209_v35 }
 0x82d   : > { %v4101_v37 = vpop.eup %4100 }
 0x82e   : > { %v1210_v39 = vmul.f32 %v4101_v37, %v4095_v25  ;;  %v4103_v40 = vpop.eup %4102 }
 0x82f   : > { %v1414_v43 = vmul.f32 %v4103_v40, %v4091_v17 }
 0x830   : > { %3808 = vmatmul.mubr.msk.f32.vlgmr.msra.gmra.mxu1 %vm984_vm5, %v1210_v39 }
 0x831   : > { %3818 = vmatpush3.msra.mxu1 %v1418_v31  ;;  %3821 = vmatprep.mubr.msk.f32.mxu1 %vm984_vm5, %v1413_v42 }
 0x832   : > { %3819 = vmatprep.subr.mxu1 %v1416_v41 }
 0x833   : > { %3820 = vmatpush3.msra.mxu1 %v1416_v41 }
 0x834   : > { %3824 = vmatprep.subr.msk.mxu1 %vm896_vm4, %v1509_v38  ;;  %3822 = vmatmul.mubr.msk.f32.vlgmr.msra.gmra.mxu1 %vm984_vm5, %v1414_v43 }
 0x835   : > { %3825 = vmatpush3.xpose.msk.msra.mxu1 %vm896_vm4, %v1509_v38  ;;  %3828 = vmatprep.mubr.msk.f32.mxu1 %vm896_vm4, %v1503_v44 }
 0x836   : > { %3826 = vmatprep.subr.msk.mxu1 %vm896_vm4, %v1507_v45 }
 0x839   : > { %3827 = vmatpush3.xpose.msk.msra.mxu1 %vm896_vm4, %v1507_v45 }
 0x83c   : > { %3829 = vmatmul.mubr.msk.f32.vlgmr.msra.gmra.mxu1 %vm896_vm4, %v1505_v47 }
 0x8f0   : > { %v3809_v49 = vpop.f32.mrf.mxu1 }
 0x8f2   : > { %v1289_v51 = vpop.f32.mrf.mxu1 }
 0x8f3   : > { %v4024_v52 = vpack.i.bf16 %v3809_v49, %v1289_v51 }
 0x8f4   : > { %v3823_v53 = vpop.f32.mrf.mxu1 }
 0x8f6   : > { %v1493_v54 = vpop.f32.mrf.mxu1 }
 0x8f7   : > { %v4029_v55 = vpack.i.bf16 %v3823_v53, %v1493_v54 }
 0x8fc   : > { %v3830_v56 = vpop.f32.mrf.mxu1 }
 0x8fd   : > { %v1594_v57 = vmul.f32 0.35355338, %v3830_v56 }
 0x8fe   : > { %v1584_v58 = vpop.f32.mrf.mxu1 }
 0x8ff   : > { %v1593_v59 = vmul.f32 0.35355338, %v1584_v58  ;;  %v1596_v60 = vadd.f32 %v1594_v57, %v4523_v11 }
 0x901   : > { %v1600_v61 = vsel %vm984_vm5, %v1596_v60, -inf  ;;  %v1595_v0 = vadd.f32 %v1593_v59, %v4528_v14 }
 0x902   : > { %1601 = vmax.xlane.f32.xlu0 %v1600_v61 }
 0x903   : > { %v1597_v1 = vsel %vm984_vm5, %v1595_v0, -inf }
 0x904   : > { %1598 = vmax.xlane.f32.xlu1 %v1597_v1 }
 0x98b   : > { %v1602_v2 = vpop.xlane.xlu0 %1601 }
 0x98c   : > { %v1604_v4 = vsub.f32 %v1596_v60, %v1602_v2  ;;  %v4059_v2 = vld [vmem:[%s4993_s13] sm:$0xff]  }
 0x98d   : > { %v1599_v5 = vpop.xlane.xlu1 %1598 }
 0x98e   : > { %v1607_v7 = vmul.f32 1.442695, %v1604_v4  ;;  %v1603_v8 = vsub.f32 %v1595_v0, %v1599_v5 }
 0x990   : > { %4104 = vpow2.f32 %v1607_v7  ;;  %v1605_v9 = vmul.f32 1.442695, %v1603_v8 }
 0x992   : > { %4106 = vpow2.f32 %v1605_v9 }
 0x99d   : > { %v4105_v10 = vpop.eup %4104 }
 0x99e   : > { %v1612_v12 = vsel %vm984_vm5, %v4105_v10, 0.0 }
 0x99f   : > { %v4107_v13 = vpop.eup %4106  ;;  %1613 = vadd.xlane.f32.xlu1 %v1612_v12 }
 0x9a0   : > { %v1609_v15 = vsel %vm984_vm5, %v4107_v13, 0.0 }
 0x9a1   : > { %1610 = vadd.xlane.f32.xlu0 %v1609_v15  ;;  %v3529_v15 = vld [vmem:[%s4991_s11] ss:$0 sm:$0xff] }
 0x9b0   : > { %1619 = vrot.lane.b32.xlu1 %v4504_v3, %s5020_s26 }
 0x9b4   : > { %4025 = vrot.lane.b32.xlu1 %v4024_v52, %s5019_s0 }
 0x9b7   : > { %1621 = vrot.lane.b32.xlu0 %v4508_v6, %s5020_s26  ;;  %v4056_v6 = vld [vmem:[%s4989_s9 + $0x8] sm:$0xff]   ;;  %s5073_s26 = smov 24  }
 0x9b8   : > { %3839 = vmatpush3.bf16.msra.mxu0 %v4056_v6  ;;  %v4060_v6 = vld [vmem:[%s4995_s15 + $0x18] sm:$0xff]  }
 0x9b9   : > { %3840 = vmatprep.subr.bf16.mxu0 %v4238_v46 }
 0x9bb   : > { %4030 = vrot.lane.b32.xlu0 %v4029_v55, %s5018_s28  ;;  %s5063_s28 = smov 112  }
 0x9bc   : > { %3841 = vmatpush3.bf16.msra.mxu0 %v4057_v23  ;;  %v4061_v23 = vld [vmem:[%s4995_s15 + $0x10] sm:$0xff]  }
 0x9bd   : > { %3854 = vmatprep.subr.bf16.mxu0 %v4238_v46 }
 0xa28   : > { %v1614_v16 = vpop.xlane.xlu1 %1613 }
 0xa29   : > { %4108 = vrcp.f32 %v1614_v16 }
 0xa2a   : > { %v1611_v17 = vpop.xlane.xlu0 %1610 }
 0xa2b   : > { %4110 = vrcp.f32 %v1611_v17 }
 0xa2c   : > { %v1620_v19 = vpop.permute.xlu1 %1619 }
 0xa2e   : > { %v1622_v18 = vpop.permute.xlu0 %1621 }
 0xa2f   : > { %3831 = vmatprep.subr.mxu1 %v1622_v18 }
 0xa30   : > { %3832 = vmatpush3.msra.mxu1 %v1622_v18  ;;  %v4026_v27 = vpop.permute.xlu1 %4025 }
 0xa31   : > { %3833 = vmatprep.subr.mxu1 %v1620_v19  ;;  %v4028_v28 = vunpack.i.h.bf16 %v4026_v27  ;;  %v4027_v29 = vunpack.i.l.bf16 %v4026_v27 }
 0xa32   : > { %3834 = vmatpush3.msra.mxu1 %v1620_v19  ;;  %v4031_v30 = vpop.permute.xlu0 %4030  ;;  %v3530_v19 = vld [vmem:[%s4992_s12] ss:$0 sm:$0xff] }
 0xa33   : > { %3846 = vmatprep.subr.bf16.mxu1 %v4238_v46  ;;  %v4033_v31 = vunpack.i.h.bf16 %v4031_v30  ;;  %v4032_v32 = vunpack.i.l.bf16 %v4031_v30  ;;  %v1731_v33 = vsel %vm896_vm4, %v4573_v48, %v4028_v28  ;;  %v1730_v34 = vsel %vm896_vm4, %v4575_v50, %v4027_v29  ;;  %v3525_v48 = vld [vmem:[%s4990_s10] ss:$0 sm:$0xff] }
 0xa35   : > { %v1732_v38 = vsel %vm984_vm5, %v1730_v34, %v4032_v32  ;;  %v1733_v39 = vsel %vm984_vm5, %v1731_v33, %v4033_v31 }
 0xa36   : > { %v4109_v3 = vpop.eup %4108 }
 0xa37   : > { %v1618_v22 = vmul.f32 %v4109_v3, %v4105_v10 }
 0xa38   : > { %v4111_v20 = vpop.eup %4110 }
 0xa39   : > { %v1617_v21 = vmul.f32 %v4111_v20, %v4107_v13 }
 0xa3b   : > { %3835 = vmatprep.mubr.msk.f32.mxu1 %vm984_vm5, %v1617_v21 }
 0xa3c   : > { %3836 = vmatmul.mubr.msk.f32.vlgmr.msra.gmra.mxu1 %vm984_vm5, %v1618_v22 }
 0xa3d   : > { %3850 = vmatprep.mubr.msk.bf16.mxu1 %vm4239_vm3, %v4238_v46 }
 0xafc   : > { %v3837_v24 = vpop.f32.mrf.mxu1 }
 0xafe   : > { %v1697_v25 = vpop.f32.mrf.mxu1 }
 0xaff   : > { %v4034_v26 = vpack.i.bf16 %v3837_v24, %v1697_v25  ;;  %v4062_v24 = vld [vmem:[%s4995_s15 + $0x8] sm:$0xff]   ;;  %v4063_v25 = vld [vmem:[%s4995_s15] sm:$0xff]  }
 0xb01   : > { %4035 = vrot.lane.b32.xlu1 %v4034_v26, %s5026_s29  ;;  %v3531_v26 = vld [vmem:[%s4994_s14] ss:$0 sm:$0xff]  ;;  %s5064_s29 = smov 80  }
 0xb73   : > { %v4036_v35 = vpop.permute.xlu1 %4035 }
 0xb74   : > { %v4038_v36 = vunpack.i.h.bf16 %v4036_v35  ;;  %v4037_v37 = vunpack.i.l.bf16 %v4036_v35 }
 0xb76   : > { %v1735_v40 = vsel %vm1734_vm6, %v1732_v38, %v4037_v37  ;;  %v1736_v41 = vsel %vm1734_vm6, %v1733_v39, %v4038_v36 }
 0xb77   : > { %v1737_v42 = vpack.c.bf16 %v1736_v41, %v1735_v40 }
 0xb79   : > { %3843 = vmatmul.mubr.msk.bf16.vlgmr.msra.gmra.mxu0 %vm776_vm2, %v1737_v42 }
 0xb7a   : > { %3862 = vmatprep.mubr.msk.bf16.mxu0 %vm4239_vm3, %v4238_v46  ;;  %3855 = vmatpush3.bf16.msra.mxu0 %v4060_v6  ;;  %v3541_v6 = vld [vmem:[%s4997_s17] ss:$0 sm:$0xff] }
 0xb7b   : > { %3856 = vmatprep.subr.bf16.mxu0 %v4238_v46 }
 0xb7e   : > { %3857 = vmatpush3.bf16.msra.mxu0 %v4061_v23 }
 0xb7f   : > { %3858 = vmatprep.subr.bf16.mxu0 %v4238_v46 }
 0xb82   : > { %3859 = vmatpush3.bf16.msra.mxu0 %v4062_v24 }
 0xb83   : > { %3860 = vmatprep.subr.bf16.mxu0 %v4238_v46 }
 0xb86   : > { %3861 = vmatpush3.bf16.msra.mxu0 %v4063_v25 }
 0xc39   : > { %v1798_v50 = vpop.f32.mrf.mxu0 }
 0xc3a   : > { %v1799_v43 = vadd.f32 %v3525_v48, %v1798_v50 }
 0xc3b   : > { %v3844_v44 = vpop.f32.mrf.mxu0 }
 0xc3c   : > { %v1805_v45 = vadd.f32 %v1799_v43, %v4494_v62 }
 0xc3d   : > { %v1801_v47 = vpop.f32.mrf.mxu0 }
 0xc3e   : > { %v1802_v49 = vadd.f32 %v3525_v48, %v1801_v47  ;;  %v1809_v51 = vsel %vm776_vm2, %v1805_v45, 0.0 }
 0xc3f   : > { %1810 = vadd.xlane.f32.xlu0 %v1809_v51  ;;  %v3845_v52 = vpop.f32.mrf.mxu0 }
 0xc40   : > { %v1806_v53 = vadd.f32 %v1802_v49, %v4496_v63  ;;  %v4058_v63 = vld [vmem:[%s4993_s13 + $0x8] sm:$0xff]  }
 0xc41   : > { %3847 = vmatpush3.bf16.msra.mxu1 %v4058_v63 }
 0xc42   : > { %v1812_v54 = vsel %vm776_vm2, %v1806_v53, 0.0  ;;  %3848 = vmatprep.subr.bf16.mxu1 %v4238_v46 }
 0xc43   : > { %1813 = vadd.xlane.f32.xlu1 %v1812_v54 }
 0xc45   : > { %3849 = vmatpush3.bf16.msra.mxu1 %v4059_v2 }
 0xc46   : > { %3866 = vmatprep.subr.bf16.mxu1 %v4238_v46 }
 0xcc8   : > { %v1811_v55 = vpop.xlane.xlu0 %1810 }
 0xcc9   : > { %v1815_v56 = vmul.f32 0.03125, %v1811_v55 }
 0xccb   : > { %v1817_v57 = vsub.f32 %v1805_v45, %v1815_v56 }
 0xccc   : > { %v1814_v58 = vpop.xlane.xlu1 %1813 }
 0xccd   : > { %v1816_v59 = vmul.f32 0.03125, %v1814_v58  ;;  %v1819_v60 = vmul.f32 %v1817_v57, %v1817_v57 }
 0xccf   : > { %v1818_v61 = vsub.f32 %v1806_v53, %v1816_v59  ;;  %v1821_v62 = vsel %vm776_vm2, %v1819_v60, 0.0  ;;  %v3535_v53 = vld [vmem:[%s4996_s16] ss:$0 sm:$0xff] }
 0xcd0   : > { %1822 = vadd.xlane.f32.xlu0 %v1821_v62 }
 0xcd1   : > { %v1820_v0 = vmul.f32 %v1818_v61, %v1818_v61 }
 0xcd3   : > { %v1824_v1 = vsel %vm776_vm2, %v1820_v0, 0.0 }
 0xcd4   : > { %1825 = vadd.xlane.f32.xlu0 %v1824_v1 }
 0xd59   : > { %v1823_v4 = vpop.xlane.xlu0 %1822 }
 0xd5a   : > { %v1827_v5 = vmul.f32 0.03125, %v1823_v4 }
 0xd5c   : > { %v1829_v7 = vadd.f32 1e-12, %v1827_v5 }
 0xd5d   : > { %v1826_v8 = vpop.xlane.xlu0 %1825 }
 0xd5e   : > { %4112 = vrsqrt.f32 %v1829_v7  ;;  %v1828_v9 = vmul.f32 0.03125, %v1826_v8 }
 0xd60   : > { %v1830_v10 = vadd.f32 1e-12, %v1828_v9 }
 0xd62   : > { %4114 = vrsqrt.f32 %v1830_v10 }
 0xd6b   : > { %v4113_v12 = vpop.eup %4112 }
 0xd6c   : > { %v1833_v13 = vmul.f32 %v4113_v12, %v1817_v57 }
 0xd6e   : > { %v1841_v18 = vmul.f32 %v3529_v15, %v1833_v13  ;;  %v4064_v13 = vld [vmem:[%s5057_s7 + $0x18] sm:$0xff]  }
 0xd6f   : > { %v4115_v16 = vpop.eup %4114 }
 0xd70   : > { %v1834_v17 = vmul.f32 %v4115_v16, %v1818_v61  ;;  %v1849_v20 = vadd.f32 %v3530_v19, %v1841_v18 }
 0xd72   : > { %v1842_v3 = vmul.f32 %v3529_v15, %v1834_v17  ;;  %v4065_v15 = vld [vmem:[%s5057_s7 + $0x10] sm:$0xff]   ;;  %s4254_s7 = smov [#allocation2]  }
 0xd74   : > { %v1850_v21 = vadd.f32 %v3530_v19, %v1842_v3 }
 0xd76   : > { %v1851_v22 = vpack.c.bf16 %v1850_v21, %v1849_v20 }
 0xd78   : > { %3851 = vmatmul.mubr.msk.bf16.vlgmr.msra.gmra.mxu1 %vm776_vm2, %v1851_v22 }
 0xd79   : > { %3870 = vmatprep.mubr.msk.bf16.mxu1 %vm4239_vm3, %v4238_v46  ;;  %3867 = vmatpush3.bf16.msra.mxu1 %v4064_v13 }
 0xd7a   : > { %3868 = vmatprep.subr.bf16.mxu1 %v4238_v46 }
 0xd7d   : > { %3869 = vmatpush3.bf16.msra.mxu1 %v4065_v15 }
 0xe38   : > { %v1912_v27 = vpop.f32.mrf.mxu1 }
 0xe39   : > { %v1913_v28 = vadd.f32 %v3531_v26, %v1912_v27 }
 0xe3a   : > { %v3852_v29 = vpop.f32.mrf.mxu1 }
 0xe3b   : > { %v1921_v30 = vmul.f32 0.044715, %v1913_v28  ;;  %v1919_v44 = vmul.f32 0.5, %v1913_v28 }
 0xe3c   : > { %v1915_v31 = vpop.f32.mrf.mxu1 }
 0xe3d   : > { %v1923_v32 = vmul.f32 %v1921_v30, %v1913_v28  ;;  %v1916_v33 = vadd.f32 %v3531_v26, %v1915_v31  ;;  %v3542_v26 = vld [vmem:[%s4998_s18] ss:$0 sm:$0xff]  ;;  %v3548_v31 = vld [vmem:[%s5060_s8 + $0x1] ss:$0 sm:$0xff]  ;;  %s4178_s8 = sshll.u32 %s4254_s7, 4  ;;  %s4179_s8 = int_to_ptr.vmem [resolvable:$false] %s4178_s8 }
 0xe3e   : > { %v3853_v34 = vpop.f32.mrf.mxu1 }
 0xe3f   : > { %v1925_v35 = vmul.f32 %v1923_v32, %v1913_v28  ;;  %v1922_v36 = vmul.f32 0.044715, %v1916_v33  ;;  %v1920_v45 = vmul.f32 0.5, %v1916_v33 }
 0xe41   : > { %v1927_v37 = vadd.f32 %v1925_v35, %v1913_v28  ;;  %v1924_v38 = vmul.f32 %v1922_v36, %v1916_v33 }
 0xe43   : > { %v1929_v39 = vmul.f32 0.7978846, %v1927_v37  ;;  %v1926_v40 = vmul.f32 %v1924_v38, %v1916_v33 }
 0xe45   : > { %4116 = vtanh.f32 %v1929_v39  ;;  %v1928_v41 = vadd.f32 %v1926_v40, %v1916_v33 }
 0xe47   : > { %v1930_v42 = vmul.f32 0.7978846, %v1928_v41 }
 0xe49   : > { %4118 = vtanh.f32 %v1930_v42 }
 0xe52   : > { %v4117_v48 = vpop.eup %4116 }
 0xe53   : > { %v1933_v50 = vadd.f32 1.0, %v4117_v48 }
 0xe55   : > { %v1935_v49 = vmul.f32 %v1933_v50, %v1919_v44 }
 0xe56   : > { %v4119_v43 = vpop.eup %4118 }
 0xe57   : > { %v1934_v47 = vadd.f32 1.0, %v4119_v43 }
 0xe59   : > { %v1936_v51 = vmul.f32 %v1934_v47, %v1920_v45 }
 0xe5b   : > { %v1937_v52 = vpack.c.bf16 %v1936_v51, %v1935_v49 }
 0xe5d   : > { %3863 = vmatmul.mubr.msk.bf16.vlgmr.msra.gmra.mxu0 %vm1977_vm7, %v1937_v52 }
 0xf1d   : > { %v2015_v54 = vpop.f32.mrf.mxu0 }
 0xf1e   : > { %v2016_v55 = vadd.f32 %v3535_v53, %v2015_v54 }
 0xf1f   : > { %v3864_v56 = vpop.f32.mrf.mxu0 }
 0xf20   : > { %v2022_v57 = vadd.f32 %v2016_v55, %v1849_v20 }
 0xf21   : > { %v2018_v58 = vpop.f32.mrf.mxu0 }
 0xf22   : > { %v2019_v59 = vadd.f32 %v3535_v53, %v2018_v58  ;;  %v2026_v60 = vsel %vm776_vm2, %v2022_v57, 0.0 }
 0xf23   : > { %2027 = vadd.xlane.f32.xlu1 %v2026_v60  ;;  %v3865_v61 = vpop.f32.mrf.mxu0 }
 0xf24   : > { %v2023_v62 = vadd.f32 %v2019_v59, %v1850_v21 }
 0xf26   : > { %v2029_v0 = vsel %vm776_vm2, %v2023_v62, 0.0 }
 0xf27   : > { %2030 = vadd.xlane.f32.xlu0 %v2029_v0 }
 0xfac   : > { %v2028_v1 = vpop.xlane.xlu1 %2027 }
 0xfad   : > { %v2032_v63 = vmul.f32 0.03125, %v2028_v1 }
 0xfaf   : > { %v2034_v2 = vsub.f32 %v2022_v57, %v2032_v63 }
 0xfb0   : > { %v2031_v4 = vpop.xlane.xlu0 %2030 }
 0xfb1   : > { %v2033_v5 = vmul.f32 0.03125, %v2031_v4  ;;  %v2036_v7 = vmul.f32 %v2034_v2, %v2034_v2 }
 0xfb3   : > { %v2035_v8 = vsub.f32 %v2023_v62, %v2033_v5  ;;  %v2038_v9 = vsel %vm776_vm2, %v2036_v7, 0.0 }
 0xfb4   : > { %2039 = vadd.xlane.f32.xlu1 %v2038_v9 }
 0xfb5   : > { %v2037_v10 = vmul.f32 %v2035_v8, %v2035_v8 }
 0xfb7   : > { %v2041_v12 = vsel %vm776_vm2, %v2037_v10, 0.0 }
 0xfb8   : > { %2042 = vadd.xlane.f32.xlu0 %v2041_v12 }
0x103d   : > { %v2040_v16 = vpop.xlane.xlu1 %2039 }
0x103e   : > { %v2044_v17 = vmul.f32 0.03125, %v2040_v16 }
0x1040   : > { %v2046_v18 = vadd.f32 1e-12, %v2044_v17 }
0x1041   : > { %v2043_v19 = vpop.xlane.xlu0 %2042 }
0x1042   : > { %4120 = vrsqrt.f32 %v2046_v18  ;;  %v2045_v3 = vmul.f32 0.03125, %v2043_v19 }
0x1044   : > { %v2047_v20 = vadd.f32 1e-12, %v2045_v3 }
0x1046   : > { %4122 = vrsqrt.f32 %v2047_v20 }
0x104f   : > { %v4121_v21 = vpop.eup %4120 }
0x1050   : > { %v2050_v22 = vmul.f32 %v4121_v21, %v2034_v2 }
0x1052   : > { %v2058_v25 = vmul.f32 %v3541_v6, %v2050_v22 }
0x1053   : > { %v4123_v23 = vpop.eup %4122 }
0x1054   : > { %v2051_v24 = vmul.f32 %v4123_v23, %v2035_v8  ;;  %v4717_v28 = vadd.f32 %v3542_v26, %v2058_v25 }
0x1056   : > { %v2059_v27 = vmul.f32 %v3541_v6, %v2051_v24 }
0x1058   : > { %v4719_v29 = vadd.f32 %v3542_v26, %v2059_v27 }
0x105a   : > { %v2068_v30 = vpack.c.bf16 %v4719_v29, %v4717_v28 }
0x105c   : > { %3871 = vmatmul.mubr.msk.bf16.vlgmr.msra.gmra.mxu1 %vm776_vm2, %v2068_v30 }
0x111c   : > { %v2131_v32 = vpop.f32.mrf.mxu1 }
0x111d   : > { %v4727_v33 = vadd.f32 %v3548_v31, %v2131_v32 }
0x111e   : > { %v3872_v34 = vpop.f32.mrf.mxu1 }
0x111f   : > { %3878 = vmatprep.mubr.msk.f32.mxu1 %vm896_vm4, %v4727_v33 }
0x1120   : > { %v2134_v35 = vpop.f32.mrf.mxu1 }
0x1121   : > { %v4731_v36 = vadd.f32 %v3548_v31, %v2134_v35 }
0x1122   : > { %v3873_v37 = vpop.f32.mrf.mxu1 }
0x1123   : > { %2346 = vrot.lane.b32.xlu0 %v4731_v36, %s4243_s23  ;;  %2142 = vrot.lane.b32.xlu1 %v4731_v36, %s4240_s27 }
0x1127   : > { %2340 = vrot.lane.b32.xlu0 %v4727_v33, %s5062_s1  ;;  %2140 = vrot.lane.b32.xlu1 %v4727_v33, %s4240_s27  ;;  %s5065_s27 = smov 64  }
0x112b   : > { %2342 = vrot.lane.b32.xlu0 %v4731_v36, %s5062_s1  ;;  %2344 = vrot.lane.b32.xlu1 %v4727_v33, %s4243_s23  ;;  %s5066_s23 = smov 56  }
0x112f   : > { %2544 = vrot.lane.b32.xlu0 %v4727_v33, %s5063_s28  ;;  %2550 = vrot.lane.b32.xlu1 %v4731_v36, %s5064_s29 }
0x1133   : > { %2548 = vrot.lane.b32.xlu1 %v4727_v33, %s5064_s29  ;;  %s5070_s29 = smov 40  }
0x1137   : > { %2546 = vrot.lane.b32.xlu1 %v4731_v36, %s5063_s28 }
0x1195   : > { %v2347_v38 = vpop.permute.xlu0 %2346  ;;  %v2143_v39 = vpop.permute.xlu1 %2142 }
0x1196   : > { %3874 = vmatprep.subr.msk.mxu1 %vm896_vm4, %v2143_v39  ;;  %3888 = vmatprep.subr.msk.mxu0 %vm896_vm4, %v2347_v38 }
0x1197   : > { %3875 = vmatpush3.xpose.msk.msra.mxu1 %vm896_vm4, %v2143_v39  ;;  %3889 = vmatpush3.xpose.msk.msra.mxu0 %vm896_vm4, %v2347_v38 }
0x1199   : > { %v2341_v40 = vpop.permute.xlu0 %2340  ;;  %v2141_v41 = vpop.permute.xlu1 %2140 }
0x119a   : > { %3876 = vmatprep.subr.msk.mxu1 %vm896_vm4, %v2141_v41  ;;  %3892 = vmatprep.mubr.msk.f32.mxu0 %vm896_vm4, %v2341_v40 }
0x119b   : > { %3877 = vmatpush3.xpose.msk.msra.mxu1 %vm896_vm4, %v2141_v41 }
0x119d   : > { %v2343_v42 = vpop.permute.xlu0 %2342  ;;  %v2345_v48 = vpop.permute.xlu1 %2344 }
0x119e   : > { %3879 = vmatmul.mubr.msk.f32.vlgmr.msra.gmra.mxu1 %vm896_vm4, %v4731_v36  ;;  %3890 = vmatprep.subr.msk.mxu0 %vm896_vm4, %v2345_v48 }
0x119f   : > { %3891 = vmatpush3.xpose.msk.msra.mxu0 %vm896_vm4, %v2345_v48 }
0x11a1   : > { %v2545_v50 = vpop.permute.xlu0 %2544  ;;  %v2551_v43 = vpop.permute.xlu1 %2550 }
0x11a2   : > { %3893 = vmatmul.mubr.msk.f32.vlgmr.msra.gmra.mxu0 %vm896_vm4, %v2343_v42  ;;  %3902 = vmatprep.subr.msk.mxu0 %vm896_vm4, %v2551_v43 }
0x11a3   : > { %3903 = vmatpush3.xpose.msk.msra.mxu0 %vm896_vm4, %v2551_v43  ;;  %3906 = vmatprep.mubr.msk.f32.mxu0 %vm896_vm4, %v2545_v50 }
0x11a5   : > { %v2549_v44 = vpop.permute.xlu1 %2548 }
0x11a6   : > { %3904 = vmatprep.subr.msk.mxu0 %vm896_vm4, %v2549_v44 }
0x11a7   : > { %3905 = vmatpush3.xpose.msk.msra.mxu0 %vm896_vm4, %v2549_v44 }
0x11a9   : > { %v2547_v45 = vpop.permute.xlu1 %2546 }
0x11aa   : > { %3907 = vmatmul.mubr.msk.f32.vlgmr.msra.gmra.mxu0 %vm896_vm4, %v2547_v45 }
0x125e   : > { %v3880_v47 = vpop.f32.mrf.mxu1 }
0x125f   : > { %v2228_v49 = vmul.f32 0.35355338, %v3880_v47 }
0x1260   : > { %v2218_v51 = vpop.f32.mrf.mxu1 }
0x1261   : > { %v2227_v52 = vmul.f32 0.35355338, %v2218_v51  ;;  %v2230_v53 = vadd.f32 %v2228_v49, %v4523_v11 }
0x1262   : > { %v3894_v54 = vpop.f32.mrf.mxu0 }
0x1263   : > { %v2234_v55 = vsel %vm984_vm5, %v2230_v53, -inf  ;;  %v2229_v56 = vadd.f32 %v2227_v52, %v4528_v14  ;;  %v2432_v58 = vmul.f32 0.35355338, %v3894_v54 }
0x1264   : > { %2235 = vmax.xlane.f32.xlu1 %v2234_v55  ;;  %v2422_v57 = vpop.f32.mrf.mxu0 }
0x1265   : > { %v2431_v59 = vmul.f32 0.35355338, %v2422_v57  ;;  %v2231_v60 = vsel %vm984_vm5, %v2229_v56, -inf  ;;  %v2434_v0 = vadd.f32 %v2432_v58, %v4523_v11 }
0x1266   : > { %2232 = vmax.xlane.f32.xlu0 %v2231_v60 }
0x1267   : > { %v2433_v61 = vadd.f32 %v2431_v59, %v4528_v14  ;;  %v2438_v2 = vsel %vm984_vm5, %v2434_v0, -inf }
0x1269   : > { %v2435_v62 = vsel %vm984_vm5, %v2433_v61, -inf }
0x126a   : > { %v3908_v1 = vpop.f32.mrf.mxu0  ;;  %2436 = vmax.xlane.f32.xlu0 %v2435_v62 }
0x126b   : > { %v2636_v63 = vmul.f32 0.35355338, %v3908_v1 }
0x126d   : > { %v2638_v4 = vadd.f32 %v2636_v63, %v4523_v11  ;;  %v2626_v11 = vpop.f32.mrf.mxu0 }
0x126e   : > { %2439 = vmax.xlane.f32.xlu0 %v2438_v2  ;;  %v2635_v7 = vmul.f32 0.35355338, %v2626_v11 }
0x126f   : > { %v2642_v5 = vsel %vm984_vm5, %v2638_v4, -inf }
0x1270   : > { %v2637_v8 = vadd.f32 %v2635_v7, %v4528_v14 }
0x1272   : > { %2643 = vmax.xlane.f32.xlu0 %v2642_v5  ;;  %v2639_v9 = vsel %vm984_vm5, %v2637_v8, -inf }
0x1275   : > { %2255 = vrot.lane.b32.xlu1 %v4731_v36, %s5065_s27 }
0x1279   : > { %2459 = vrot.lane.b32.xlu1 %v4731_v36, %s5066_s23 }
0x127d   : > { %2457 = vrot.lane.b32.xlu1 %v4727_v33, %s5066_s23  ;;  %s5072_s23 = smov 16  }
0x1288   : > { %2253 = vrot.lane.b32.xlu0 %v4727_v33, %s5065_s27  ;;  %s5071_s27 = smov 8  }
0x128c   : > { %2663 = vrot.lane.b32.xlu0 %v4731_v36, %s5067_s2 }
0x12a1   : > { %2640 = vmax.xlane.f32.xlu1 %v2639_v9 }
0x12b2   : > { %2661 = vrot.lane.b32.xlu1 %v4727_v33, %s5067_s2 }
0x12ed   : > { %v2236_v10 = vpop.xlane.xlu1 %2235 }
0x12ee   : > { %v2238_v12 = vsub.f32 %v2230_v53, %v2236_v10 }
0x12ef   : > { %v2233_v13 = vpop.xlane.xlu0 %2232 }
0x12f0   : > { %v2241_v15 = vmul.f32 1.442695, %v2238_v12  ;;  %v2237_v16 = vsub.f32 %v2229_v56, %v2233_v13 }
0x12f1   : > { %v2256_v17 = vpop.permute.xlu1 %2255 }
0x12f2   : > { %4124 = vpow2.f32 %v2241_v15  ;;  %v2239_v18 = vmul.f32 1.442695, %v2237_v16  ;;  %3881 = vmatprep.subr.mxu1 %v2256_v17 }
0x12f3   : > { %3882 = vmatpush3.msra.mxu1 %v2256_v17  ;;  %v2437_v19 = vpop.xlane.xlu0 %2436 }
0x12f4   : > { %4126 = vpow2.f32 %v2239_v18  ;;  %v2441_v3 = vsub.f32 %v2433_v61, %v2437_v19 }
0x12f5   : > { %v2460_v31 = vpop.permute.xlu1 %2459 }
0x12f6   : > { %v2443_v14 = vmul.f32 1.442695, %v2441_v3 }
0x12f7   : > { %v2440_v20 = vpop.xlane.xlu0 %2439 }
0x12f8   : > { %4128 = vpow2.f32 %v2443_v14  ;;  %v2442_v21 = vsub.f32 %v2434_v0, %v2440_v20  ;;  %v4172_v14 = vld [vmem:[%s5061_s21 + $0x8] sm:$0xff] }
0x12f9   : > { %v2458_v41 = vpop.permute.xlu1 %2457 }
0x12fa   : > { %v2445_v22 = vmul.f32 1.442695, %v2442_v21 }
0x12fb   : > { %v2644_v6 = vpop.xlane.xlu0 %2643 }
0x12fc   : > { %4130 = vpow2.f32 %v2445_v22  ;;  %v2646_v23 = vsub.f32 %v2638_v4, %v2644_v6  ;;  %v4173_v22 = vld [vmem:[%s5061_s21] sm:$0xff] }
0x12fe   : > { %v2649_v24 = vmul.f32 1.442695, %v2646_v23 }
0x12ff   : > { %v4125_v25 = vpop.eup %4124  ;;  %v2254_v26 = vpop.permute.xlu0 %2253 }
0x1300   : > { %4132 = vpow2.f32 %v2649_v24  ;;  %3883 = vmatprep.subr.mxu1 %v2254_v26  ;;  %v2246_v27 = vsel %vm984_vm5, %v4125_v25, 0.0 }
0x1301   : > { %v4127_v30 = vpop.eup %4126  ;;  %2247 = vadd.xlane.f32.xlu0 %v2246_v27  ;;  %3884 = vmatpush3.msra.mxu1 %v2254_v26 }
0x1302   : > { %3895 = vmatprep.subr.mxu1 %v2460_v31  ;;  %v2243_v32 = vsel %vm984_vm5, %v4127_v30, 0.0 }
0x1303   : > { %2244 = vadd.xlane.f32.xlu1 %v2243_v32  ;;  %v2664_v45 = vpop.permute.xlu0 %2663 }
0x1305   : > { %v4129_v34 = vpop.eup %4128 }
0x1306   : > { %v2447_v35 = vsel %vm984_vm5, %v4129_v34, 0.0 }
0x1307   : > { %2448 = vadd.xlane.f32.xlu1 %v2447_v35 }
0x1309   : > { %v4131_v37 = vpop.eup %4130 }
0x130a   : > { %v2450_v38 = vsel %vm984_vm5, %v4131_v37, 0.0 }
0x130b   : > { %2451 = vadd.xlane.f32.xlu0 %v2450_v38 }
0x130d   : > { %v4133_v39 = vpop.eup %4132 }
0x130e   : > { %v2654_v40 = vsel %vm984_vm5, %v4133_v39, 0.0 }
0x130f   : > { %2655 = vadd.xlane.f32.xlu0 %v2654_v40 }
0x1318   : > { %2752 = vrot.lane.b32.xlu1 %v4727_v33, %s5068_s22 }
0x1325   : > { %2754 = vrot.lane.b32.xlu0 %v4731_v36, %s5068_s22 }
0x1329   : > { %2748 = vrot.lane.b32.xlu0 %v4727_v33, %s5069_s24 }
0x132a   : > { %v2641_v42 = vpop.xlane.xlu1 %2640 }
0x132b   : > { %v2645_v48 = vsub.f32 %v2637_v8, %v2641_v42 }
0x132d   : > { %v2647_v50 = vmul.f32 1.442695, %v2645_v48 }
0x132e   : > { %v2662_v47 = vpop.permute.xlu1 %2661 }
0x132f   : > { %4134 = vpow2.f32 %v2647_v50 }
0x133c   : > { %v4135_v43 = vpop.eup %4134 }
0x133d   : > { %v2651_v44 = vsel %vm984_vm5, %v4135_v43, 0.0 }
0x133e   : > { %2652 = vadd.xlane.f32.xlu1 %v2651_v44 }
0x134f   : > { %2750 = vrot.lane.b32.xlu1 %v4731_v36, %s5069_s24 }
0x138a   : > { %v2248_v49 = vpop.xlane.xlu0 %2247 }
0x138b   : > { %4136 = vrcp.f32 %v2248_v49 }
0x138c   : > { %v2245_v51 = vpop.xlane.xlu1 %2244 }
0x138d   : > { %4138 = vrcp.f32 %v2245_v51 }
0x1390   : > { %v2449_v52 = vpop.xlane.xlu1 %2448 }
0x1391   : > { %4140 = vrcp.f32 %v2449_v52 }
0x1394   : > { %v2452_v53 = vpop.xlane.xlu0 %2451  ;;  %v2753_v1 = vpop.permute.xlu1 %2752 }
0x1395   : > { %4142 = vrcp.f32 %v2452_v53 }
0x1398   : > { %v4137_v54 = vpop.eup %4136  ;;  %v2656_v61 = vpop.xlane.xlu0 %2655 }
0x1399   : > { %v2252_v57 = vmul.f32 %v4137_v54, %v4125_v25  ;;  %4144 = vrcp.f32 %v2656_v61 }
0x139a   : > { %v4139_v55 = vpop.eup %4138 }
0x139b   : > { %v2251_v56 = vmul.f32 %v4139_v55, %v4127_v30 }
0x139c   : > { %v2755_v0 = vpop.permute.xlu0 %2754 }
0x139d   : > { %3885 = vmatprep.mubr.msk.f32.mxu1 %vm984_vm5, %v2251_v56 }
0x139e   : > { %v4141_v58 = vpop.eup %4140  ;;  %3886 = vmatmul.mubr.msk.f32.vlgmr.msra.gmra.mxu1 %vm984_vm5, %v2252_v57 }
0x139f   : > { %3896 = vmatpush3.msra.mxu1 %v2460_v31  ;;  %v2455_v59 = vmul.f32 %v4141_v58, %v4129_v34 }
0x13a0   : > { %3897 = vmatprep.subr.mxu1 %v2458_v41  ;;  %v2749_v7 = vpop.permute.xlu0 %2748 }
0x13a1   : > { %3898 = vmatpush3.msra.mxu1 %v2458_v41  ;;  %3899 = vmatprep.mubr.msk.f32.mxu1 %vm984_vm5, %v2455_v59 }
0x13a2   : > { %v4143_v60 = vpop.eup %4142  ;;  %3909 = vmatprep.subr.mxu1 %v2664_v45 }
0x13a3   : > { %v2456_v62 = vmul.f32 %v4143_v60, %v4131_v37 }
0x13a5   : > { %3900 = vmatmul.mubr.msk.f32.vlgmr.msra.gmra.mxu1 %vm984_vm5, %v2456_v62 }
0x13a6   : > { %3910 = vmatpush3.msra.mxu1 %v2664_v45  ;;  %v4145_v2 = vpop.eup %4144  ;;  %v4067_v45 = vld [vmem:[%s4989_s9 + $0x10] sm:$0xff]  }
0x13a7   : > { %3911 = vmatprep.subr.mxu1 %v2662_v47  ;;  %v2660_v11 = vmul.f32 %v4145_v2, %v4133_v39 }
0x13a8   : > { %3912 = vmatpush3.msra.mxu1 %v2662_v47 }
0x13a9   : > { %3916 = vmatprep.subr.msk.mxu1 %vm896_vm4, %v2755_v0 }
0x13c7   : > { %v2653_v63 = vpop.xlane.xlu1 %2652 }
0x13c8   : > { %4146 = vrcp.f32 %v2653_v63 }
0x13cb   : > { %v2751_v8 = vpop.permute.xlu1 %2750 }
0x13d5   : > { %v4147_v4 = vpop.eup %4146 }
0x13d6   : > { %v2659_v5 = vmul.f32 %v4147_v4, %v4135_v43 }
0x13d8   : > { %3913 = vmatprep.mubr.msk.f32.mxu1 %vm984_vm5, %v2659_v5  ;;  %v3581_v5 = vld [vmem:[%s4990_s10 + $0x1] ss:$0 sm:$0xff] }
0x13d9   : > { %3914 = vmatmul.mubr.msk.f32.vlgmr.msra.gmra.mxu1 %vm984_vm5, %v2660_v11 }
0x13da   : > { %3917 = vmatpush3.xpose.msk.msra.mxu1 %vm896_vm4, %v2755_v0  ;;  %3920 = vmatprep.mubr.msk.f32.mxu1 %vm896_vm4, %v2749_v7 }
0x13db   : > { %3918 = vmatprep.subr.msk.mxu1 %vm896_vm4, %v2753_v1 }
0x13de   : > { %3919 = vmatpush3.xpose.msk.msra.mxu1 %vm896_vm4, %v2753_v1 }
0x13df   : > { %3938 = vmatprep.subr.bf16.mxu1 %v4238_v46 }
0x13e1   : > { %3921 = vmatmul.mubr.msk.f32.vlgmr.msra.gmra.mxu1 %vm896_vm4, %v2751_v8 }
0x13e2   : > { %3942 = vmatprep.mubr.msk.bf16.mxu1 %vm4239_vm3, %v4238_v46 }
0x145e   : > { %v4824_v9 = vpop.f32.mrf.mxu1 }
0x1460   : > { %v4826_v10 = vpop.f32.mrf.mxu1 }
0x1465   : > { %v3901_v12 = vpop.f32.mrf.mxu1 }
0x1467   : > { %v2535_v13 = vpop.f32.mrf.mxu1 }
0x1468   : > { %v4039_v24 = vpack.i.bf16 %v3901_v12, %v2535_v13 }
0x1499   : > { %v3915_v15 = vpop.f32.mrf.mxu1 }
0x149b   : > { %v2739_v16 = vpop.f32.mrf.mxu1 }
0x149c   : > { %v4044_v25 = vpack.i.bf16 %v3915_v15, %v2739_v16 }
0x14a1   : > { %v3922_v17 = vpop.f32.mrf.mxu1 }
0x14a2   : > { %v2840_v18 = vmul.f32 0.35355338, %v3922_v17 }
0x14a3   : > { %v2830_v19 = vpop.f32.mrf.mxu1 }
0x14a4   : > { %v2839_v3 = vmul.f32 0.35355338, %v2830_v19  ;;  %v2842_v20 = vadd.f32 %v4172_v14, %v2840_v18 }
0x14a6   : > { %v2846_v21 = vsel %vm984_vm5, %v2842_v20, -inf  ;;  %v2841_v6 = vadd.f32 %v4173_v22, %v2839_v3 }
0x14a7   : > { %2847 = vmax.xlane.f32.xlu1 %v2846_v21 }
0x14a8   : > { %v2843_v23 = vsel %vm984_vm5, %v2841_v6, -inf }
0x14a9   : > { %2844 = vmax.xlane.f32.xlu0 %v2843_v23 }
0x14b8   : > { %2867 = vrot.lane.b32.xlu1 %v4731_v36, %s5070_s29 }
0x14bc   : > { %4040 = vrot.lane.b32.xlu1 %v4039_v24, %s5071_s27  ;;  %v4069_v24 = vld [vmem:[%s4993_s13 + $0x10] sm:$0xff]  }
0x14c0   : > { %4045 = vrot.lane.b32.xlu1 %v4044_v25, %s5072_s23  ;;  %s3623_s23 = sshll.u32 %s4386_s3, 5  ;;  %s4180_s3 = scalar_lea.vmem %s4179_s8, 64 }
0x1530   : > { %v2848_v26 = vpop.xlane.xlu1 %2847 }
0x1531   : > { %v2850_v27 = vsub.f32 %v2842_v20, %v2848_v26 }
0x1532   : > { %v2845_v30 = vpop.xlane.xlu0 %2844 }
0x1533   : > { %v2853_v31 = vmul.f32 1.442695, %v2850_v27  ;;  %v2849_v32 = vsub.f32 %v2841_v6, %v2845_v30 }
0x1534   : > { %v2868_v34 = vpop.permute.xlu1 %2867 }
0x1535   : > { %4148 = vpow2.f32 %v2853_v31  ;;  %v2851_v35 = vmul.f32 1.442695, %v2849_v32  ;;  %3923 = vmatprep.subr.mxu0 %v2868_v34 }
0x1536   : > { %3924 = vmatpush3.msra.mxu0 %v2868_v34 }
0x1537   : > { %4150 = vpow2.f32 %v2851_v35 }
0x1538   : > { %v4041_v52 = vpop.permute.xlu1 %4040 }
0x1539   : > { %v4043_v54 = vunpack.i.h.bf16 %v4041_v52  ;;  %v4042_v55 = vunpack.i.l.bf16 %v4041_v52 }
0x153b   : > { %v2977_v59 = vsel %vm896_vm4, %v4824_v9, %v4043_v54  ;;  %v2976_v60 = vsel %vm896_vm4, %v4826_v10, %v4042_v55 }
0x153c   : > { %v4046_v53 = vpop.permute.xlu1 %4045 }
0x153d   : > { %v4048_v56 = vunpack.i.h.bf16 %v4046_v53  ;;  %v4047_v57 = vunpack.i.l.bf16 %v4046_v53 }
0x153f   : > { %v2978_v0 = vsel %vm984_vm5, %v2976_v60, %v4047_v57  ;;  %v2979_v1 = vsel %vm984_vm5, %v2977_v59, %v4048_v56 }
0x1542   : > { %v4149_v37 = vpop.eup %4148 }
0x1543   : > { %v2858_v36 = vsel %vm984_vm5, %v4149_v37, 0.0 }
0x1544   : > { %v4151_v38 = vpop.eup %4150  ;;  %2859 = vadd.xlane.f32.xlu0 %v2858_v36 }
0x1545   : > { %v2855_v39 = vsel %vm984_vm5, %v4151_v38, 0.0 }
0x1548   : > { %2856 = vadd.xlane.f32.xlu0 %v2855_v39 }
0x155e   : > { %2865 = vrot.lane.b32.xlu0 %v4727_v33, %s5070_s29  ;;  %v4066_v33 = vld [vmem:[%s4989_s9 + $0x18] sm:$0xff]   ;;  %s648_s29 = sand.u32 1, %s4226_s25  }
0x155f   : > { %s3489_s27 = sshll.u32 %s648_s29, 1  ;;  %s3413_s4 = scalar_lea.sflag [#allocation3], %s648_s29 }
0x1560   : > { %s650_s2 = scalar_lea.vmem [#allocation2], %s3489_s27 }
0x1561   : > { %s3426_s22 = sshll.u32 %s650_s2, 4  ;;  %s3427_s22 = int_to_ptr.vmem [resolvable:$true] %s3426_s22 }
0x1562   : > { %s4174_s6 = scalar_lea.vmem %s3427_s22, 32  ;;  %p4181_p0 = scmp.lt.s32.totalorder %s3427_s22, %s4179_s8 }
0x1563   : > { %p4175_p11 = scmp.ne.s32.totalorder %s3427_s22, %s4174_s6  ;;  %p4182_p1 = scmp.lt.s32.totalorder %s4180_s3, %s4174_s6 }
0x1565   : > { %p4176_p12 = pnand %p4175_p11, %p4403_p5  ;;  %p4183_p2 = por %p4182_p1, %p4181_p0 }
0x1567   : > { %p4177_p13 = pneg %p4176_p12 }
0x1569   : > { %p4184_p3 = pnand %p4183_p2, %p4177_p13 }
0x15cd   : > { %v2860_v40 = vpop.xlane.xlu0 %2859 }
0x15ce   : > { %4152 = vrcp.f32 %v2860_v40  ;;  %v3588_v40 = vld [vmem:[%s4992_s12 + $0x1] ss:$0 sm:$0xff] }
0x15d1   : > { %v2857_v41 = vpop.xlane.xlu0 %2856 }
0x15d2   : > { %4154 = vrcp.f32 %v2857_v41 }
0x15d5   : > { %v2866_v42 = vpop.permute.xlu0 %2865 }
0x15d6   : > { %3925 = vmatprep.subr.mxu0 %v2866_v42 }
0x15d7   : > { %3926 = vmatpush3.msra.mxu0 %v2866_v42 }
0x15d8   : > { %3930 = vmatprep.subr.bf16.mxu0 %v4238_v46 }
0x15db   : > { %v4153_v48 = vpop.eup %4152 }
0x15dc   : > { %v2864_v44 = vmul.f32 %v4153_v48, %v4149_v37  ;;  %v3587_v37 = vld [vmem:[%s4991_s11 + $0x1] ss:$0 sm:$0xff] }
0x15df   : > { %v4155_v50 = vpop.eup %4154 }
0x15e0   : > { %v2863_v43 = vmul.f32 %v4155_v50, %v4151_v38 }
0x15e2   : > { %3927 = vmatprep.mubr.msk.f32.mxu0 %vm984_vm5, %v2863_v43  ;;  %v4070_v43 = vld [vmem:[%s4995_s15 + $0x38] sm:$0xff]  }
0x15e3   : > { %3928 = vmatmul.mubr.msk.f32.vlgmr.msra.gmra.mxu0 %vm984_vm5, %v2864_v44  ;;  %v4071_v44 = vld [vmem:[%s4995_s15 + $0x30] sm:$0xff]  }
0x15e4   : > { %3934 = vmatprep.mubr.msk.bf16.mxu0 %vm4239_vm3, %v4238_v46  ;;  %3931 = vmatpush3.bf16.msra.mxu0 %v4066_v33  ;;  %v4072_v33 = vld [vmem:[%s4995_s15 + $0x28] sm:$0xff]  }
0x15e5   : > { %3932 = vmatprep.subr.bf16.mxu0 %v4238_v46 }
0x15e8   : > { %3933 = vmatpush3.bf16.msra.mxu0 %v4067_v45  ;;  %v4073_v45 = vld [vmem:[%s4995_s15 + $0x20] sm:$0xff]  }
0x15e9   : > { %3946 = vmatprep.subr.bf16.mxu0 %v4238_v46 }
0x16a3   : > { %v3929_v47 = vpop.f32.mrf.mxu0 }
0x16a5   : > { %v2943_v49 = vpop.f32.mrf.mxu0 }
0x16a6   : > { %v4049_v51 = vpack.i.bf16 %v3929_v47, %v2943_v49  ;;  %v3594_v47 = vld [vmem:[%s4994_s14 + $0x1] ss:$0 sm:$0xff] }
0x16a8   : > { %4050 = vrot.lane.b32.xlu0 %v4049_v51, %s5073_s26  ;;  %s5074_s26 = sld [smem:[#allocation20_spill]] }
0x16ae   : > { %s5075_s1 = smov %s5074_s26  ;;  %s4945_s28 = scalar_lea.hbm %s5074_s26, %s3623_s23 }
0x171a   : > { %v4051_v58 = vpop.permute.xlu0 %4050 }
0x171b   : > { %v4053_v61 = vunpack.i.h.bf16 %v4051_v58  ;;  %v4052_v62 = vunpack.i.l.bf16 %v4051_v58 }
0x171d   : > { %v2981_v63 = vsel %vm1734_vm6, %v2979_v1, %v4053_v61  ;;  %v2980_v2 = vsel %vm1734_vm6, %v2978_v0, %v4052_v62 }
0x171e   : > { %v2982_v4 = vpack.c.bf16 %v2981_v63, %v2980_v2 }
0x1720   : > { %3935 = vmatmul.mubr.msk.bf16.vlgmr.msra.gmra.mxu0 %vm776_vm2, %v2982_v4 }
0x1721   : > { %3954 = vmatprep.mubr.msk.bf16.mxu0 %vm4239_vm3, %v4238_v46  ;;  %3947 = vmatpush3.bf16.msra.mxu0 %v4070_v43 }
0x1722   : > { %3948 = vmatprep.subr.bf16.mxu0 %v4238_v46 }
0x1725   : > { %3949 = vmatpush3.bf16.msra.mxu0 %v4071_v44 }
0x1726   : > { %3950 = vmatprep.subr.bf16.mxu0 %v4238_v46 }
0x1729   : > { %3951 = vmatpush3.bf16.msra.mxu0 %v4072_v33 }
0x172a   : > { %3952 = vmatprep.subr.bf16.mxu0 %v4238_v46 }
0x172d   : > { %3953 = vmatpush3.bf16.msra.mxu0 %v4073_v45 }
0x17e0   : > { %v3045_v11 = vpop.f32.mrf.mxu0 }
0x17e1   : > { %v3046_v7 = vadd.f32 %v3581_v5, %v3045_v11 }
0x17e2   : > { %v3936_v8 = vpop.f32.mrf.mxu0 }
0x17e3   : > { %v3052_v9 = vadd.f32 %v3046_v7, %v4717_v28 }
0x17e4   : > { %v3048_v10 = vpop.f32.mrf.mxu0 }
0x17e5   : > { %v3049_v12 = vadd.f32 %v3581_v5, %v3048_v10  ;;  %v3058_v13 = vsel %vm776_vm2, %v3052_v9, 0.0 }
0x17e6   : > { %3059 = vadd.xlane.f32.xlu1 %v3058_v13  ;;  %v3937_v15 = vpop.f32.mrf.mxu0  ;;  %v3607_v13 = vld [vmem:[%s4996_s16 + $0x1] ss:$0 sm:$0xff] }
0x17e7   : > { %v3053_v16 = vadd.f32 %v3049_v12, %v4719_v29  ;;  %v4068_v29 = vld [vmem:[%s4993_s13 + $0x18] sm:$0xff]  }
0x17e8   : > { %3939 = vmatpush3.bf16.msra.mxu1 %v4068_v29 }
0x17e9   : > { %v3061_v17 = vsel %vm776_vm2, %v3053_v16, 0.0  ;;  %3940 = vmatprep.subr.bf16.mxu1 %v4238_v46 }
0x17ea   : > { %3062 = vadd.xlane.f32.xlu0 %v3061_v17 }
0x17ec   : > { %3941 = vmatpush3.bf16.msra.mxu1 %v4069_v24 }
0x17ed   : > { %3958 = vmatprep.subr.bf16.mxu1 %v4238_v46 }
0x186f   : > { %v3060_v18 = vpop.xlane.xlu1 %3059 }
0x1870   : > { %v3064_v19 = vmul.f32 0.03125, %v3060_v18 }
0x1872   : > { %v3066_v3 = vsub.f32 %v3052_v9, %v3064_v19 }
0x1873   : > { %v3063_v14 = vpop.xlane.xlu0 %3062 }
0x1874   : > { %v3065_v20 = vmul.f32 0.03125, %v3063_v14  ;;  %v3068_v21 = vmul.f32 %v3066_v3, %v3066_v3 }
0x1876   : > { %v3067_v22 = vsub.f32 %v3053_v16, %v3065_v20  ;;  %v3070_v28 = vsel %vm776_vm2, %v3068_v21, 0.0 }
0x1877   : > { %3071 = vadd.xlane.f32.xlu0 %v3070_v28 }
0x1878   : > { %v3069_v6 = vmul.f32 %v3067_v22, %v3067_v22 }
0x187a   : > { %v3073_v23 = vsel %vm776_vm2, %v3069_v6, 0.0 }
0x187b   : > { %3074 = vadd.xlane.f32.xlu1 %v3073_v23 }
0x1900   : > { %v3072_v25 = vpop.xlane.xlu0 %3071 }
0x1901   : > { %v3076_v26 = vmul.f32 0.03125, %v3072_v25 }
0x1903   : > { %v3078_v27 = vadd.f32 1e-12, %v3076_v26 }
0x1904   : > { %v3075_v30 = vpop.xlane.xlu1 %3074 }
0x1905   : > { %4156 = vrsqrt.f32 %v3078_v27  ;;  %v3077_v31 = vmul.f32 0.03125, %v3075_v30 }
0x1907   : > { %v3079_v32 = vadd.f32 1e-12, %v3077_v31 }
0x1909   : > { %4158 = vrsqrt.f32 %v3079_v32  ;;  %v4074_v32 = vld [vmem:[%s4999_s19 + $0x8] sm:$0xff]  }
0x1912   : > { %v4157_v34 = vpop.eup %4156 }
0x1913   : > { %v3082_v35 = vmul.f32 %v4157_v34, %v3066_v3  ;;  %v4075_v34 = vld [vmem:[%s4999_s19] sm:$0xff]  }
0x1915   : > { %v3090_v39 = vmul.f32 %v3587_v37, %v3082_v35 }
0x1916   : > { %v4159_v36 = vpop.eup %4158 }
0x1917   : > { %v3083_v38 = vmul.f32 %v4159_v36, %v3067_v22  ;;  %v3098_v42 = vadd.f32 %v3588_v40, %v3090_v39 }
0x1919   : > { %v3091_v41 = vmul.f32 %v3587_v37, %v3083_v38 }
0x191b   : > { %v3099_v48 = vadd.f32 %v3588_v40, %v3091_v41 }
0x191d   : > { %v3100_v50 = vpack.c.bf16 %v3099_v48, %v3098_v42 }
0x191f   : > { %3943 = vmatmul.mubr.msk.bf16.vlgmr.msra.gmra.mxu1 %vm776_vm2, %v3100_v50  ;;  %v3616_v50 = vld [vmem:[%s4998_s18 + $0x1] ss:$0 sm:$0xff] }
0x1920   : > { %3962 = vmatprep.mubr.msk.bf16.mxu1 %vm4239_vm3, %v4238_v46  ;;  %3959 = vmatpush3.bf16.msra.mxu1 %v4074_v32 }
0x1921   : > { %3960 = vmatprep.subr.bf16.mxu1 %v4238_v46 }
0x1924   : > { %3961 = vmatpush3.bf16.msra.mxu1 %v4075_v34 }
0x19df   : > { %v3163_v49 = vpop.f32.mrf.mxu1 }
0x19e0   : > { %v3164_v51 = vadd.f32 %v3594_v47, %v3163_v49 }
0x19e1   : > { %v3944_v52 = vpop.f32.mrf.mxu1 }
0x19e2   : > { %v3172_v53 = vmul.f32 0.044715, %v3164_v51  ;;  %v3170_v11 = vmul.f32 0.5, %v3164_v51 }
0x19e3   : > { %v3166_v54 = vpop.f32.mrf.mxu1 }
0x19e4   : > { %v3174_v55 = vmul.f32 %v3172_v53, %v3164_v51  ;;  %v3167_v56 = vadd.f32 %v3594_v47, %v3166_v54 }
0x19e5   : > { %v3945_v57 = vpop.f32.mrf.mxu1 }
0x19e6   : > { %v3176_v58 = vmul.f32 %v3174_v55, %v3164_v51  ;;  %v3173_v59 = vmul.f32 0.044715, %v3167_v56  ;;  %v3171_v7 = vmul.f32 0.5, %v3167_v56 }
0x19e8   : > { %v3178_v60 = vadd.f32 %v3176_v58, %v3164_v51  ;;  %v3175_v61 = vmul.f32 %v3173_v59, %v3167_v56 }
0x19ea   : > { %v3180_v62 = vmul.f32 0.7978846, %v3178_v60  ;;  %v3177_v0 = vmul.f32 %v3175_v61, %v3167_v56 }
0x19ec   : > { %4160 = vtanh.f32 %v3180_v62  ;;  %v3179_v1 = vadd.f32 %v3177_v0, %v3167_v56 }
0x19ee   : > { %v3181_v63 = vmul.f32 0.7978846, %v3179_v1 }
0x19f0   : > { %4162 = vtanh.f32 %v3181_v63 }
0x19f9   : > { %v4161_v2 = vpop.eup %4160 }
0x19fa   : > { %v3184_v4 = vadd.f32 1.0, %v4161_v2  ;;  %v3617_v2 = vld [vmem:[%s5000_s20] ss:$0 sm:$0xff] }
0x19fc   : > { %v3186_v9 = vmul.f32 %v3184_v4, %v3170_v11 }
0x19fd   : > { %v4163_v5 = vpop.eup %4162 }
0x19fe   : > { %v3185_v8 = vadd.f32 1.0, %v4163_v5 }
0x1a00   : > { %v3187_v10 = vmul.f32 %v3185_v8, %v3171_v7 }
0x1a02   : > { %v3188_v12 = vpack.c.bf16 %v3187_v10, %v3186_v9 }
0x1a04   : > { %3955 = vmatmul.mubr.msk.bf16.vlgmr.msra.gmra.mxu0 %vm1977_vm7, %v3188_v12 }
0x1ac4   : > { %v3267_v15 = vpop.f32.mrf.mxu0 }
0x1ac5   : > { %v3268_v16 = vadd.f32 %v3607_v13, %v3267_v15 }
0x1ac6   : > { %v3956_v17 = vpop.f32.mrf.mxu0 }
0x1ac7   : > { %v3274_v18 = vadd.f32 %v3268_v16, %v3098_v42  ;;  %v3615_v42 = vld [vmem:[%s4997_s17 + $0x1] ss:$0 sm:$0xff] }
0x1ac8   : > { %v3270_v19 = vpop.f32.mrf.mxu0 }
0x1ac9   : > { %v3271_v3 = vadd.f32 %v3607_v13, %v3270_v19  ;;  %v3280_v14 = vsel %vm776_vm2, %v3274_v18, 0.0 }
0x1aca   : > { %3281 = vadd.xlane.f32.xlu0 %v3280_v14  ;;  %v3957_v20 = vpop.f32.mrf.mxu0 }
0x1acb   : > { %v3275_v21 = vadd.f32 %v3271_v3, %v3099_v48 }
0x1acd   : > { %v3283_v22 = vsel %vm776_vm2, %v3275_v21, 0.0 }
0x1ace   : > { %3284 = vadd.xlane.f32.xlu1 %v3283_v22 }
0x1b53   : > { %v3282_v28 = vpop.xlane.xlu0 %3281 }
0x1b54   : > { %v3286_v6 = vmul.f32 0.03125, %v3282_v28 }
0x1b56   : > { %v3288_v23 = vsub.f32 %v3274_v18, %v3286_v6 }
0x1b57   : > { %v3285_v29 = vpop.xlane.xlu1 %3284 }
0x1b58   : > { %v3287_v24 = vmul.f32 0.03125, %v3285_v29  ;;  %v3290_v25 = vmul.f32 %v3288_v23, %v3288_v23 }
0x1b5a   : > { %v3289_v26 = vsub.f32 %v3275_v21, %v3287_v24  ;;  %v3292_v27 = vsel %vm776_vm2, %v3290_v25, 0.0 }
0x1b5b   : > { %3293 = vadd.xlane.f32.xlu0 %v3292_v27 }
0x1b5c   : > { %v3291_v30 = vmul.f32 %v3289_v26, %v3289_v26 }
0x1b5e   : > { %v3295_v31 = vsel %vm776_vm2, %v3291_v30, 0.0 }
0x1b5f   : > { %3296 = vadd.xlane.f32.xlu1 %v3295_v31 }
0x1be4   : > { %v3294_v35 = vpop.xlane.xlu0 %3293 }
0x1be5   : > { %v3298_v37 = vmul.f32 0.03125, %v3294_v35 }
0x1be7   : > { %v3300_v36 = vadd.f32 1e-12, %v3298_v37 }
0x1be8   : > { %v3297_v38 = vpop.xlane.xlu1 %3296 }
0x1be9   : > { %4164 = vrsqrt.f32 %v3300_v36  ;;  %v3299_v39 = vmul.f32 0.03125, %v3297_v38 }
0x1beb   : > { %v3301_v40 = vadd.f32 1e-12, %v3299_v39 }
0x1bed   : > { %4166 = vrsqrt.f32 %v3301_v40 }
0x1bf6   : > { %v4165_v41 = vpop.eup %4164 }
0x1bf7   : > { %v3304_v48 = vmul.f32 %v4165_v41, %v3288_v23 }
0x1bf9   : > { %v3312_v46 = vmul.f32 %v3615_v42, %v3304_v48 }
0x1bfa   : > { %v4167_v43 = vpop.eup %4166 }
0x1bfb   : > { %v3320_v44 = vadd.f32 %v3616_v50, %v3312_v46  ;;  %v3305_v33 = vmul.f32 %v4167_v43, %v3289_v26 }
0x1bfd   : > { %v3322_v45 = vsel %vm776_vm2, %v3320_v44, -inf  ;;  %v3313_v47 = vmul.f32 %v3615_v42, %v3305_v33 }
0x1bfe   : > { %v3323_v49 = vrot.slane %v3322_v45, 4 }
0x1bff   : > { %v3321_v51 = vadd.f32 %v3616_v50, %v3313_v47 }
0x1c00   : > { %v3324_v52 = vmax.f32 %v3322_v45, %v3323_v49 }
0x1c01   : > { %v3329_v53 = vsel %vm776_vm2, %v3321_v51, -inf }
0x1c02   : > { %v3330_v54 = vrot.slane %v3329_v53, 4  ;;  %v3325_v55 = vrot.slane %v3324_v52, 2 }
0x1c04   : > { %v3326_v56 = vmax.f32 %v3324_v52, %v3325_v55  ;;  %v3331_v57 = vmax.f32 %v3329_v53, %v3330_v54 }
0x1c06   : > { %v3332_v58 = vrot.slane %v3331_v57, 2  ;;  %v3327_v59 = vrot.slane %v3326_v56, 1 }
0x1c08   : > { %v3333_v60 = vmax.f32 %v3331_v57, %v3332_v58  ;;  %v3328_v62 = vmax.f32 %v3326_v56, %v3327_v59 }
0x1c0a   : > { %v3334_v61 = vrot.slane %v3333_v60, 1 }
0x1c0c   : > { %v3335_v0 = vmax.f32 %v3333_v60, %v3334_v61 }
0x1c0e   : > { %v3337_v1 = vsel %vm3336_vm8, %v3328_v62, %v3335_v0 }
0x1c0f   : > { %v3338_v63 = vpack.c.bf16 %v3337_v1, %v3337_v1 }
0x1c11   : > { %3963 = vmatmul.mubr.msk.bf16.vlgmr.msra.gmra.mxu1 %vm776_vm2, %v3338_v63 }
0x1cd1   : > { %v3399_v4 = vpop.f32.mrf.mxu1 }
0x1cd2   : > { %v3400_v5 = vadd.f32 %v3617_v2, %v3399_v4 }
0x1cd3   : > { %v3964_v11 = vpop.f32.mrf.mxu1 }
0x1cd4   : > { %v3621_v7 = vmul.f32 -1.442695, %v3400_v5 }
0x1cd5   : > { %v3402_v8 = vpop.f32.mrf.mxu1 }
0x1cd6   : > { %4168 = vpow2.f32 %v3621_v7 }
0x1cd7   : > { %v3965_v9 = vpop.f32.mrf.mxu1 }
0x1ce3   : > { %v4169_v10 = vpop.eup %4168 }
0x1ce4   : > { %v3408_v12 = vadd.f32 1.0, %v4169_v10 }
0x1ce6   : > { %4170 = vrcp.f32 %v3408_v12 }
0x1cf3   : > { %v4171_v13 = vpop.eup %4170 }
0x1cf4   : > { %3411 = vst [vmem:[%s650_s2] sm:$0x3] %v4171_v13 }
0x1cf5   : > { %4187 = shalt.err (!%p4184_p3)
}
0x1cf6   : > { %s4188_s27 = scalar_lea.hbm %s4945_s28, 32  ;;  %s4192_s7 = scalar_lea.hbm %s5075_s1, 64 }
0x1cf7   : > { %p4189_p4 = scmp.ne.s32.totalorder %s4945_s28, %s4188_s27  ;;  %p4193_p9 = scmp.lt.s32.totalorder %s4945_s28, %s5075_s1 }
0x1cf8   : > { %p4194_p10 = scmp.lt.s32.totalorder %s4192_s7, %s4188_s27 }
0x1cf9   : > { %p4190_p7 = pnand %p4189_p4, %p4403_p5 }
0x1cfa   : > { %p4195_p11 = por %p4194_p10, %p4193_p9 }
0x1cfb   : > { %p4191_p8 = pneg %p4190_p7 }
0x1cfd   : > { %p4196_p12 = pnand %p4195_p11, %p4191_p8 }
0x1cff   : > { %4199 = shalt.err (!%p4196_p12)
}
0x1d00   : > { %3966 = dma.vmem_to_hbm [thread:$0]  (%p4403_p5), %s3427_s22, 32, %s4945_s28, %s3413_s4  }
0x1d01 PF: > { %s5076_s6 = sld [smem:[#allocation7_spill]] }
0x1d02   : > { %s5077_s8 = sld [smem:[#allocation5_spill]] }
0x1d07   : > { %p3972_p13 = scmp.ge.s32.totalorder %s5076_s6, 2 }
0x1d08   : > { %s3438_s26 = sand.u32 1, %s5077_s8  }
0x1d09   : > { %p3969_p0 = pnand %p3972_p13, %p4407_p6  ;;  %s3439_s3 = scalar_lea.sflag [#allocation3], %s3438_s26 }
0x1d0b   : > { %p3970_p1 = pneg %p3969_p0 }
0x1d0d   : > { %4217 = dma.done.wait (%p3970_p1), %s3439_s3, 32  }
0x1d0e   : > { %4219 = vsyncadd (%p3970_p1), %s3439_s3, 4294967264  ;;  %s5079_s27 = sld [smem:[#allocation8_spill]]  ;;  %s5082_s2 = smov %s4226_s25 }
0x1d0f   : > { %s5080_s29 = sld [smem:[#allocation6_spill]] }
0x1d10   : > { %s5081_s26 = sld [smem:[#allocation9_spill]] }
0x1d14   : > { %p31_p2 = scmp.ge.s32.totalorder %s5079_s27, 4  }
0x1d15   : > { %s5083_s25 = smov %s5080_s29 }
0x1d16   :  { %33 = sbr.rel (!%p31_p2) target bundleno = 14 (0xe), region = 151 }
0x1d1b   :  { %3444 = vsyncpa [#allocation3], 1 }
0x1d1c   :  { %3446 = vsyncpa [#allocation3 + $0x1], 1 }

</bundles_post_ra>
